<compile_context>
chip_gen: v6e
topology: v6e:2x2x1
jax: 0.10.0
libtpu: 0.0.40
codegen_flags: <defaults>
</compile_context>

<pallas_src>
import math

import jax
import jax.numpy as jnp
from jax.experimental import pallas as pl
from jax.experimental.pallas import tpu as pltpu

IMG_DIM = 28 * 28            # 784
H1 = 256
H2 = 128
OUT = 1
MAX_TILE_B = 2048            # multiple of 128; ~22 MB peak VMEM at this size
VMEM_LIMIT_BYTES = 48 * 1024 * 1024


def _round_up(x, m):
    return ((x + m - 1) // m) * m


def _leaky_relu(x, slope=0.2):
    return jnp.where(x > 0, x, slope * x)


def _choose_tile_b(batch, max_tile_b=MAX_TILE_B):
    """Multiple of 128, <= max_tile_b, and >= 2 grid steps when possible
    (so v7x can shard the parallel grid axis across both TensorCores)."""
    b128 = _round_up(batch, 128)
    if b128 <= 128:
        return 128
    half = _round_up((b128 + 1) // 2, 128)
    return min(max_tile_b, half)


def discriminator_kernel(x_ref, w1_ref, b1_ref, w2_ref, b2_ref, w3_ref, b3_ref,
                         o_ref):
    # x arrives as f32; cast to bf16 only for the MXU matmul.
    x = x_ref[...].astype(jnp.bfloat16)                       # [TB, 784]
    # Layer 1: Linear(784->256) + LeakyReLU(0.2)   (bf16 MXU, f32 accumulate)
    h1 = jnp.dot(x, w1_ref[...], preferred_element_type=jnp.float32)
    h1 = _leaky_relu(h1 + b1_ref[...])                        # [TB, 256] f32
    # Layer 2: Linear(256->128) + LeakyReLU(0.2)
    h2 = jnp.dot(h1.astype(jnp.bfloat16), w2_ref[...],
                 preferred_element_type=jnp.float32)
    h2 = _leaky_relu(h2 + b2_ref[...])                        # [TB, 128] f32
    # Layer 3: Linear(128->1) + Sigmoid — N=1, so VPU multiply + lane reduce
    # instead of a 1-column MXU matmul.
    logits = jnp.sum(h2 * w3_ref[...], axis=-1, keepdims=True) + b3_ref[...]
    probs = jax.nn.sigmoid(logits)                            # [TB, 1] f32
    # Lane-dense store: [TB, 1] column -> [1, TB] row (XLU transpose).
    o_ref[...] = probs.T


def discriminator_forward(x, params, max_tile_b=MAX_TILE_B):
    """x: [B, 784] float32 -> [B, 1] float32 (sigmoid probabilities)."""
    w1, b1, w2, b2, w3, b3 = params
    B, D = x.shape
    assert D == IMG_DIM

    tile_b = _choose_tile_b(B, max_tile_b)
    pb = _round_up(B, tile_b)
    if pb != B:
        x = jnp.pad(x, ((0, pb - B), (0, 0)))      # batch pad only (no cast)

    grid_steps = pb // tile_b

    # x / out move per grid step; weights & biases stay VMEM-resident.
    x_spec = pl.BlockSpec((tile_b, IMG_DIM), lambda i: (i, 0))
    o_spec = pl.BlockSpec((1, tile_b), lambda i: (0, i))       # lane-dense
    w1_spec = pl.BlockSpec((IMG_DIM, H1), lambda i: (0, 0))
    b1_spec = pl.BlockSpec((1, H1), lambda i: (0, 0))
    w2_spec = pl.BlockSpec((H1, H2), lambda i: (0, 0))
    b2_spec = pl.BlockSpec((1, H2), lambda i: (0, 0))
    w3_spec = pl.BlockSpec((1, H2), lambda i: (0, 0))
    b3_spec = pl.BlockSpec((1, OUT), lambda i: (0, 0))

    param_bytes = sum(int(p.size) * p.dtype.itemsize
                      for p in (w1, b1, w2, b2, w3, b3))
    cost = pl.CostEstimate(
        flops=2 * pb * (IMG_DIM * H1 + H1 * H2 + H2),
        transcendentals=pb * OUT,                  # sigmoid exp
        bytes_accessed=pb * IMG_DIM * 4 + param_bytes + pb * OUT * 4,
    )

    out = pl.pallas_call(
        discriminator_kernel,
        out_shape=jax.ShapeDtypeStruct((1, pb), jnp.float32),
        grid=(grid_steps,),
        in_specs=[x_spec, w1_spec, b1_spec, w2_spec, b2_spec, w3_spec, b3_spec],
        out_specs=o_spec,
        compiler_params=pltpu.CompilerParams(
            dimension_semantics=("parallel",),
            vmem_limit_bytes=VMEM_LIMIT_BYTES),
        cost_estimate=cost,
    )(x, w1, b1, w2, b2, w3, b3)

    return out.reshape(pb, OUT)[:B]


def init_params(key):
    """PyTorch-style U(-1/sqrt(fan_in), +) init, stored kernel-ready:
    weights [in, out] (bf16), biases / final row vector f32."""
    ks = jax.random.split(key, 6)

    def uniform(k, shape, fan_in):
        bound = 1.0 / math.sqrt(fan_in)
        return jax.random.uniform(k, shape, jnp.float32, -bound, bound)

    w1 = uniform(ks[0], (IMG_DIM, H1), IMG_DIM).astype(jnp.bfloat16)
    b1 = uniform(ks[1], (1, H1), IMG_DIM)                      # f32
    w2 = uniform(ks[2], (H1, H2), H1).astype(jnp.bfloat16)
    b2 = uniform(ks[3], (1, H2), H1)                           # f32
    w3 = uniform(ks[4], (1, H2), H2)                           # f32 row vector
    b3 = uniform(ks[5], (1, OUT), H2)                          # f32
    return (w1, b1, w2, b2, w3, b3)


def reference_forward(x, params):
    """Pure-JAX f32 reference for correctness checking."""
    w1, b1, w2, b2, w3, b3 = params
    h1 = _leaky_relu(x @ w1.astype(jnp.float32) + b1)
    h2 = _leaky_relu(h1 @ w2.astype(jnp.float32) + b2)
    logits = jnp.sum(h2 * w3, axis=-1, keepdims=True) + b3
    return jax.nn.sigmoid(logits)


if __name__ == "__main__":
    key = jax.random.PRNGKey(0)
    k_params, k_x = jax.random.split(key)

    params = init_params(k_params)
    batch = 8
    x = jax.random.normal(k_x, (batch, IMG_DIM), jnp.float32)

    out = discriminator_forward(x, params)
    out = jax.block_until_ready(out)

    ref = reference_forward(x, params)
    assert out.shape == (batch, OUT), out.shape
    # bf16 weights / in-kernel bf16 cast with f32 accumulation -> loosened tol.
    assert jnp.allclose(out, ref, atol=2e-2, rtol=2e-2), "mismatch vs reference"

    print("KERNEL_OK")
</pallas_src>

<mosaic_0001>
module attributes {stable_mosaic.version = 11 : i64} {
  func.func @discriminator_kernel(%arg0: i32, %arg1: memref<128x784xf32, #tpu.memory_space<vmem>>, %arg2: memref<784x256xbf16, #tpu.memory_space<vmem>>, %arg3: memref<1x256xf32, #tpu.memory_space<vmem>>, %arg4: memref<256x128xbf16, #tpu.memory_space<vmem>>, %arg5: memref<1x128xf32, #tpu.memory_space<vmem>>, %arg6: memref<1x128xf32, #tpu.memory_space<vmem>>, %arg7: memref<1x1xf32, #tpu.memory_space<vmem>>, %arg8: memref<1x128xf32, #tpu.memory_space<vmem>>) attributes {dimension_semantics = [#tpu.dimension_semantics<parallel>], iteration_bounds = array<i64: 1>, scalar_prefetch = 0 : i64, scratch_operands = 0 : i64, tpu.core_type = #tpu.core_type<tc>, window_params = [{transform_indices = @transform_0, window_bounds = array<i64: 128, 784>}, {pipeline_mode = #tpu.pipeline_mode<synchronous>, transform_indices = @transform_1, window_bounds = array<i64: 784, 256>}, {pipeline_mode = #tpu.pipeline_mode<synchronous>, transform_indices = @transform_2, window_bounds = array<i64: 1, 256>}, {pipeline_mode = #tpu.pipeline_mode<synchronous>, transform_indices = @transform_3, window_bounds = array<i64: 256, 128>}, {pipeline_mode = #tpu.pipeline_mode<synchronous>, transform_indices = @transform_4, window_bounds = array<i64: 1, 128>}, {pipeline_mode = #tpu.pipeline_mode<synchronous>, transform_indices = @transform_5, window_bounds = array<i64: 1, 128>}, {pipeline_mode = #tpu.pipeline_mode<synchronous>, transform_indices = @transform_6, window_bounds = array<i64: 1, 1>}, {transform_indices = @transform_7, window_bounds = array<i64: 1, 128>}]} {
    %c0 = arith.constant 0 : index
    %c0_0 = arith.constant 0 : index
    %0 = vector.load %arg1[%c0, %c0_0] : memref<128x784xf32, #tpu.memory_space<vmem>>, vector<128x784xf32>
    %1 = arith.truncf %0 : vector<128x784xf32> to vector<128x784xbf16>
    %c0_1 = arith.constant 0 : index
    %c0_2 = arith.constant 0 : index
    %2 = vector.load %arg2[%c0_1, %c0_2] : memref<784x256xbf16, #tpu.memory_space<vmem>>, vector<784x256xbf16>
    %cst = arith.constant dense<0.000000e+00> : vector<128x256xf32>
    %3 = tpu.matmul %1, %2, %cst {dimension_numbers = #tpu.dot_dimension_numbers<[1], [0], [0], [1], [0, 0, 1, 1], [], []>} : vector<128x784xbf16>, vector<784x256xbf16>, vector<128x256xf32> -> vector<128x256xf32>
    %c0_3 = arith.constant 0 : index
    %c0_4 = arith.constant 0 : index
    %4 = vector.load %arg3[%c0_3, %c0_4] : memref<1x256xf32, #tpu.memory_space<vmem>>, vector<1x256xf32>
    %5 = vector.broadcast %4 : vector<1x256xf32> to vector<128x256xf32>
    %6 = arith.addf %3, %5 : vector<128x256xf32>
    %cst_5 = arith.constant 0.000000e+00 : f32
    %7 = vector.broadcast %cst_5 : f32 to vector<128x256xf32>
    %8 = arith.cmpf ogt, %6, %7 : vector<128x256xf32>
    %cst_6 = arith.constant 2.000000e-01 : f32
    %9 = vector.broadcast %cst_6 : f32 to vector<128x256xf32>
    %10 = arith.mulf %9, %6 : vector<128x256xf32>
    %11 = arith.select %8, %6, %10 : vector<128x256xi1>, vector<128x256xf32>
    %12 = arith.truncf %11 : vector<128x256xf32> to vector<128x256xbf16>
    %c0_7 = arith.constant 0 : index
    %c0_8 = arith.constant 0 : index
    %13 = vector.load %arg4[%c0_7, %c0_8] : memref<256x128xbf16, #tpu.memory_space<vmem>>, vector<256x128xbf16>
    %cst_9 = arith.constant dense<0.000000e+00> : vector<128x128xf32>
    %14 = tpu.matmul %12, %13, %cst_9 {dimension_numbers = #tpu.dot_dimension_numbers<[1], [0], [0], [1], [0, 0, 1, 1], [], []>} : vector<128x256xbf16>, vector<256x128xbf16>, vector<128x128xf32> -> vector<128x128xf32>
    %c0_10 = arith.constant 0 : index
    %c0_11 = arith.constant 0 : index
    %15 = vector.load %arg5[%c0_10, %c0_11] : memref<1x128xf32, #tpu.memory_space<vmem>>, vector<1x128xf32>
    %16 = vector.broadcast %15 : vector<1x128xf32> to vector<128x128xf32>
    %17 = arith.addf %14, %16 : vector<128x128xf32>
    %cst_12 = arith.constant 0.000000e+00 : f32
    %18 = vector.broadcast %cst_12 : f32 to vector<128x128xf32>
    %19 = arith.cmpf ogt, %17, %18 : vector<128x128xf32>
    %cst_13 = arith.constant 2.000000e-01 : f32
    %20 = vector.broadcast %cst_13 : f32 to vector<128x128xf32>
    %21 = arith.mulf %20, %17 : vector<128x128xf32>
    %22 = arith.select %19, %17, %21 : vector<128x128xi1>, vector<128x128xf32>
    %c0_14 = arith.constant 0 : index
    %c0_15 = arith.constant 0 : index
    %23 = vector.load %arg6[%c0_14, %c0_15] : memref<1x128xf32, #tpu.memory_space<vmem>>, vector<1x128xf32>
    %24 = vector.broadcast %23 : vector<1x128xf32> to vector<128x128xf32>
    %25 = arith.mulf %22, %24 : vector<128x128xf32>
    %cst_16 = arith.constant dense<0.000000e+00> : vector<128xf32>
    %26 = vector.multi_reduction <add>, %25, %cst_16 [1] : vector<128x128xf32> to vector<128xf32>
    %27 = vector.shape_cast %26 : vector<128xf32> to vector<128x1xf32>
    %c0_17 = arith.constant 0 : index
    %c0_18 = arith.constant 0 : index
    %28 = vector.load %arg7[%c0_17, %c0_18] : memref<1x1xf32, #tpu.memory_space<vmem>>, vector<1x1xf32>
    %29 = vector.broadcast %28 : vector<1x1xf32> to vector<128x1xf32>
    %30 = arith.addf %27, %29 : vector<128x1xf32>
    %31 = arith.negf %30 : vector<128x1xf32>
    %32 = math.exp %31 : vector<128x1xf32>
    %cst_19 = arith.constant 1.000000e+00 : f32
    %33 = vector.broadcast %cst_19 : f32 to vector<128x1xf32>
    %34 = arith.addf %33, %32 : vector<128x1xf32>
    %35 = arith.divf %33, %34 : vector<128x1xf32>
    %36 = tpu.transpose %35, [1, 0] : vector<128x1xf32> -> vector<1x128xf32>
    %c0_20 = arith.constant 0 : index
    %c0_21 = arith.constant 0 : index
    %37 = vector.load %arg8[%c0_20, %c0_21] : memref<1x128xf32, #tpu.memory_space<vmem>>, vector<1x128xf32>
    tpu.vector_store %arg8[%c0_20, %c0_21], %36 {strides = array<i32>} : memref<1x128xf32, #tpu.memory_space<vmem>>, vector<1x128xf32>,
    return
  }
  func.func @transform_0(%arg0: i32) -> (i32, i32) {
    %c0_i32 = arith.constant 0 : i32
    %c0_i32_0 = arith.constant 0 : i32
    return %arg0, %c0_i32 : i32, i32
  }
  func.func @transform_1(%arg0: i32) -> (i32, i32) {
    %c0_i32 = arith.constant 0 : i32
    %c0_i32_0 = arith.constant 0 : i32
    %c0_i32_1 = arith.constant 0 : i32
    return %c0_i32, %c0_i32_0 : i32, i32
  }
  func.func @transform_2(%arg0: i32) -> (i32, i32) {
    %c0_i32 = arith.constant 0 : i32
    %c0_i32_0 = arith.constant 0 : i32
    %c0_i32_1 = arith.constant 0 : i32
    return %c0_i32, %c0_i32_0 : i32, i32
  }
  func.func @transform_3(%arg0: i32) -> (i32, i32) {
    %c0_i32 = arith.constant 0 : i32
    %c0_i32_0 = arith.constant 0 : i32
    %c0_i32_1 = arith.constant 0 : i32
    return %c0_i32, %c0_i32_0 : i32, i32
  }
  func.func @transform_4(%arg0: i32) -> (i32, i32) {
    %c0_i32 = arith.constant 0 : i32
    %c0_i32_0 = arith.constant 0 : i32
    %c0_i32_1 = arith.constant 0 : i32
    return %c0_i32, %c0_i32_0 : i32, i32
  }
  func.func @transform_5(%arg0: i32) -> (i32, i32) {
    %c0_i32 = arith.constant 0 : i32
    %c0_i32_0 = arith.constant 0 : i32
    %c0_i32_1 = arith.constant 0 : i32
    return %c0_i32, %c0_i32_0 : i32, i32
  }
  func.func @transform_6(%arg0: i32) -> (i32, i32) {
    %c0_i32 = arith.constant 0 : i32
    %c0_i32_0 = arith.constant 0 : i32
    %c0_i32_1 = arith.constant 0 : i32
    return %c0_i32, %c0_i32_0 : i32, i32
  }
  func.func @transform_7(%arg0: i32) -> (i32, i32) {
    %c0_i32 = arith.constant 0 : i32
    %c0_i32_0 = arith.constant 0 : i32
    return %c0_i32, %arg0 : i32, i32
  }
}

</mosaic_0001>

<bundles_post_ra>
// kernel: tpu_custom_call.1
= control target key start
LH: loop header
LB: loop body
LE: loop exit
PB: predicated region body
PF: predicated region fallthrough
CT: control target
= control target key end

     0   :  { %s3355_s0 = inlined_call_operand.vmem [shape: f32[128,784], index: 0, kind: input, shape index: {}]   ;;  %s3356_s1 = inlined_call_operand.vmem [shape: bf16[784,256], index: 1, kind: input, shape index: {}]   ;;  %s3357_s2 = inlined_call_operand.vmem [shape: f32[1,256], index: 2, kind: input, shape index: {}]   ;;  %s3358_s3 = inlined_call_operand.vmem [shape: bf16[256,128], index: 3, kind: input, shape index: {}]   ;;  %s3359_s4 = inlined_call_operand.vmem [shape: f32[1,128], index: 4, kind: input, shape index: {}]   ;;  %s3360_s5 = inlined_call_operand.vmem [shape: f32[1,128], index: 5, kind: input, shape index: {}]   ;;  %s3361_s6 = inlined_call_operand.<no memory space> [shape: f32[1,1], index: 6, kind: input, shape index: {}]   ;;  %s3362_s7 = inlined_call_operand.hbm [shape: f32[1,128], index: 7, kind: output, shape index: {}]  }
   0x1   :  { %v12_v0 = vstv %s3361_s6 }
   0x2   :  { %13 = vst [vmem:[#allocation2] sm:$0x1] %v12_v0 }
   0x3   :  { %v2127_v1 = vld [vmem:[%s3356_s1 + $0x74] ss:$8 sps:$4 sm:$0xff]   ;;  %v2131_v3 = vld [vmem:[%s3356_s1 + $0x70] ss:$8 sps:$4 sm:$0xff]   ;;  %v2133_v5 = vld [vmem:[%s3356_s1 + $0x64] ss:$8 sps:$4 sm:$0xff]  }
   0x4   :  { %v2129_v2 = vld [vmem:[%s3356_s1 + $0x174] ss:$8 sps:$4 sm:$0xff]   ;;  %823 = vmatprep.subr.bf16.mxu0 %v2127_v1  ;;  %v2132_v4 = vld [vmem:[%s3356_s1 + $0x170] ss:$8 sps:$4 sm:$0xff]   ;;  %v2135_v6 = vld [vmem:[%s3356_s1 + $0x164] ss:$8 sps:$4 sm:$0xff]  }
   0x5   :  { %936 = vmatprep.subr.bf16.mxu1 %v2129_v2  ;;  %824 = vmatpush1.bf16.msra.mxu0 %v2131_v3  ;;  %v2137_v7 = vld [vmem:[%s3356_s1 + $0x60] ss:$8 sps:$4 sm:$0xff]   ;;  %v2139_v9 = vld [vmem:[%s3356_s1 + $0x54] ss:$8 sps:$4 sm:$0xff]   ;;  %v2143_v11 = vld [vmem:[%s3356_s1 + $0x50] ss:$8 sps:$4 sm:$0xff]  }
   0x6   :  { %937 = vmatpush1.bf16.msra.mxu1 %v2132_v4  ;;  %825 = vmatprep.subr.bf16.mxu0 %v2133_v5  ;;  %v2138_v8 = vld [vmem:[%s3356_s1 + $0x160] ss:$8 sps:$4 sm:$0xff]   ;;  %v2141_v10 = vld [vmem:[%s3356_s1 + $0x154] ss:$8 sps:$4 sm:$0xff]   ;;  %v2144_v12 = vld [vmem:[%s3356_s1 + $0x150] ss:$8 sps:$4 sm:$0xff]  }
   0x7   :  { %938 = vmatprep.subr.bf16.mxu1 %v2135_v6  ;;  %v2145_v13 = vld [vmem:[%s3356_s1 + $0x44] ss:$8 sps:$4 sm:$0xff]   ;;  %v2149_v15 = vld [vmem:[%s3356_s1 + $0x40] ss:$8 sps:$4 sm:$0xff]   ;;  %v2151_v17 = vld [vmem:[%s3356_s1 + $0x34] ss:$8 sps:$4 sm:$0xff]  }
   0x8   :  { %v2147_v14 = vld [vmem:[%s3356_s1 + $0x144] ss:$8 sps:$4 sm:$0xff]   ;;  %v2150_v16 = vld [vmem:[%s3356_s1 + $0x140] ss:$8 sps:$4 sm:$0xff]   ;;  %v2153_v18 = vld [vmem:[%s3356_s1 + $0x134] ss:$8 sps:$4 sm:$0xff]  }
   0x9   :  { %826 = vmatpush1.bf16.msra.mxu0 %v2137_v7  ;;  %v2155_v19 = vld [vmem:[%s3356_s1 + $0x30] ss:$8 sps:$4 sm:$0xff]   ;;  %v2157_v21 = vld [vmem:[%s3356_s1 + $0x24] ss:$8 sps:$4 sm:$0xff]   ;;  %v2161_v23 = vld [vmem:[%s3356_s1 + $0x20] ss:$8 sps:$4 sm:$0xff]  }
   0xa   :  { %939 = vmatpush1.bf16.msra.mxu1 %v2138_v8  ;;  %827 = vmatprep.subr.bf16.mxu0 %v2139_v9  ;;  %v2156_v20 = vld [vmem:[%s3356_s1 + $0x130] ss:$8 sps:$4 sm:$0xff]   ;;  %v2159_v22 = vld [vmem:[%s3356_s1 + $0x124] ss:$8 sps:$4 sm:$0xff]   ;;  %v2162_v24 = vld [vmem:[%s3356_s1 + $0x120] ss:$8 sps:$4 sm:$0xff]  }
   0xb   :  { %940 = vmatprep.subr.bf16.mxu1 %v2141_v10  ;;  %v2163_v25 = vld [vmem:[%s3356_s1 + $0x14] ss:$8 sps:$4 sm:$0xff]   ;;  %v2167_v27 = vld [vmem:[%s3356_s1 + $0x10] ss:$8 sps:$4 sm:$0xff]   ;;  %v2169_v29 = vld [vmem:[%s3356_s1 + $0x4] ss:$8 sps:$4 sm:$0xff]  }
   0xc   :  { %v2165_v26 = vld [vmem:[%s3356_s1 + $0x114] ss:$8 sps:$4 sm:$0xff]   ;;  %v2168_v28 = vld [vmem:[%s3356_s1 + $0x110] ss:$8 sps:$4 sm:$0xff]   ;;  %v2171_v30 = vld [vmem:[%s3356_s1 + $0x104] ss:$8 sps:$4 sm:$0xff]  }
   0xd   :  { %828 = vmatpush1.bf16.msra.mxu0 %v2143_v11  ;;  %v2173_v31 = vld [vmem:[%s3356_s1] ss:$8 sps:$4 sm:$0xff]   ;;  %v2175_v33 = vld [vmem:[%s3356_s1 + $0xf4] ss:$8 sps:$4 sm:$0xff]   ;;  %v2179_v35 = vld [vmem:[%s3356_s1 + $0xf0] ss:$8 sps:$4 sm:$0xff]  }
   0xe   :  { %941 = vmatpush1.bf16.msra.mxu1 %v2144_v12  ;;  %829 = vmatprep.subr.bf16.mxu0 %v2145_v13  ;;  %v2174_v32 = vld [vmem:[%s3356_s1 + $0x100] ss:$8 sps:$4 sm:$0xff]   ;;  %v2177_v34 = vld [vmem:[%s3356_s1 + $0x1f4] ss:$8 sps:$4 sm:$0xff]   ;;  %v2180_v36 = vld [vmem:[%s3356_s1 + $0x1f0] ss:$8 sps:$4 sm:$0xff]  }
   0xf   :  { %942 = vmatprep.subr.bf16.mxu1 %v2147_v14  ;;  %v2181_v37 = vld [vmem:[%s3356_s1 + $0xe4] ss:$8 sps:$4 sm:$0xff]   ;;  %v2185_v39 = vld [vmem:[%s3356_s1 + $0xe0] ss:$8 sps:$4 sm:$0xff]   ;;  %v2187_v41 = vld [vmem:[%s3356_s1 + $0xd4] ss:$8 sps:$4 sm:$0xff]  }
  0x10   :  { %v2183_v38 = vld [vmem:[%s3356_s1 + $0x1e4] ss:$8 sps:$4 sm:$0xff]   ;;  %v2186_v40 = vld [vmem:[%s3356_s1 + $0x1e0] ss:$8 sps:$4 sm:$0xff]   ;;  %v2189_v42 = vld [vmem:[%s3356_s1 + $0x1d4] ss:$8 sps:$4 sm:$0xff]  }
  0x11   :  { %830 = vmatpush1.bf16.msra.mxu0 %v2149_v15  ;;  %v2191_v43 = vld [vmem:[%s3356_s1 + $0xd0] ss:$8 sps:$4 sm:$0xff]   ;;  %v2193_v45 = vld [vmem:[%s3356_s1 + $0xc4] ss:$8 sps:$4 sm:$0xff]   ;;  %v2197_v51 = vld [vmem:[%s3356_s1 + $0xc0] ss:$8 sps:$4 sm:$0xff]  }
  0x12   :  { %943 = vmatpush1.bf16.msra.mxu1 %v2150_v16  ;;  %831 = vmatprep.subr.bf16.mxu0 %v2151_v17  ;;  %v2192_v44 = vld [vmem:[%s3356_s1 + $0x1d0] ss:$8 sps:$4 sm:$0xff]   ;;  %v2195_v46 = vld [vmem:[%s3356_s1 + $0x1c4] ss:$8 sps:$4 sm:$0xff]   ;;  %v2198_v52 = vld [vmem:[%s3356_s1 + $0x1c0] ss:$8 sps:$4 sm:$0xff]  }
  0x13   :  { %944 = vmatprep.subr.bf16.mxu1 %v2153_v18  ;;  %v31_v47 = vld [vmem:[%s3355_s0 + $0x8] sm:$0xff]  ;;  %v38_v48 = vld [vmem:[%s3355_s0 + $0x40] sm:$0xff]  ;;  %v33_v49 = vld [vmem:[%s3355_s0 + $0x18] sm:$0xff] }
  0x14   :  { %v40_v50 = vld [vmem:[%s3355_s0 + $0x50] sm:$0xff]  ;;  %v143_v54 = vpack.c.bf16 %v38_v48, %v31_v47  ;;  %v2205_v59 = vld [vmem:[%s3356_s1 + $0xa4] ss:$8 sps:$4 sm:$0xff]   ;;  %v2209_v61 = vld [vmem:[%s3356_s1 + $0xa0] ss:$8 sps:$4 sm:$0xff]  }
  0x15   :  { %832 = vmatpush1.bf16.msra.mxu0 %v2155_v19  ;;  %v2199_v53 = vld [vmem:[%s3356_s1 + $0xb4] ss:$8 sps:$4 sm:$0xff]   ;;  %v145_v55 = vpack.c.bf16 %v40_v50, %v33_v49  ;;  %v2203_v57 = vld [vmem:[%s3356_s1 + $0xb0] ss:$8 sps:$4 sm:$0xff]   ;;  %v2207_v60 = vld [vmem:[%s3356_s1 + $0x1a4] ss:$8 sps:$4 sm:$0xff]  }
  0x16   :  { %945 = vmatpush1.bf16.msra.mxu1 %v2156_v20  ;;  %833 = vmatprep.subr.bf16.mxu0 %v2157_v21  ;;  %v2201_v56 = vld [vmem:[%s3356_s1 + $0x1b4] ss:$8 sps:$4 sm:$0xff]   ;;  %v2204_v58 = vld [vmem:[%s3356_s1 + $0x1b0] ss:$8 sps:$4 sm:$0xff]   ;;  %v2210_v62 = vld [vmem:[%s3356_s1 + $0x1a0] ss:$8 sps:$4 sm:$0xff]  }
  0x17   :  { %946 = vmatprep.subr.bf16.mxu1 %v2159_v22  ;;  %855 = vmatprep.mubr.bf16.mxu0 %v143_v54  ;;  %v2211_v63 = vld [vmem:[%s3356_s1 + $0x94] ss:$8 sps:$4 sm:$0xff]   ;;  %v2215_v1 = vld [vmem:[%s3356_s1 + $0x90] ss:$8 sps:$4 sm:$0xff]   ;;  %v2217_v3 = vld [vmem:[%s3356_s1 + $0x84] ss:$8 sps:$4 sm:$0xff]  }
  0x18   :  { %968 = vmatprep.mubr.bf16.mxu1 %v145_v55  ;;  %v2213_v0 = vld [vmem:[%s3356_s1 + $0x194] ss:$8 sps:$4 sm:$0xff]   ;;  %v2216_v2 = vld [vmem:[%s3356_s1 + $0x190] ss:$8 sps:$4 sm:$0xff]   ;;  %v2219_v4 = vld [vmem:[%s3356_s1 + $0x184] ss:$8 sps:$4 sm:$0xff]  }
  0x19   :  { %834 = vmatpush1.bf16.msra.mxu0 %v2161_v23  ;;  %v2221_v5 = vld [vmem:[%s3356_s1 + $0x80] ss:$8 sps:$4 sm:$0xff]   ;;  %v37_v8 = vld [vmem:[%s3355_s0 + $0x38] sm:$0xff]  ;;  %v32_v9 = vld [vmem:[%s3355_s0 + $0x10] sm:$0xff] }
  0x1a   :  { %947 = vmatpush1.bf16.msra.mxu1 %v2162_v24  ;;  %835 = vmatprep.subr.bf16.mxu0 %v2163_v25  ;;  %v2222_v6 = vld [vmem:[%s3356_s1 + $0x180] ss:$8 sps:$4 sm:$0xff]   ;;  %v2225_v11 = vld [vmem:[%s3356_s1 + $0x274] ss:$8 sps:$4 sm:$0xff]   ;;  %v2223_v18 = vld [vmem:[%s3356_s1 + $0x270] ss:$8 sps:$4 sm:$0xff]  }
  0x1b   :  { %948 = vmatprep.subr.bf16.mxu1 %v2165_v26  ;;  %v30_v7 = vld [vmem:[%s3355_s0] sm:$0xff]  ;;  %v39_v10 = vld [vmem:[%s3355_s0 + $0x48] sm:$0xff]  ;;  %v45_v12 = vld [vmem:[%s3355_s0 + $0x78] sm:$0xff] }
  0x1c   :  { %v52_v13 = vld [vmem:[%s3355_s0 + $0xb0] sm:$0xff]  ;;  %v142_v14 = vpack.c.bf16 %v37_v8, %v30_v7  ;;  %v144_v15 = vpack.c.bf16 %v39_v10, %v32_v9  ;;  %v47_v16 = vld [vmem:[%s3355_s0 + $0x88] sm:$0xff]  ;;  %v54_v17 = vld [vmem:[%s3355_s0 + $0xc0] sm:$0xff] }
  0x1d   :  { %836 = vmatpush1.bf16.msra.mxu0 %v2167_v27  ;;  %v2228_v19 = vld [vmem:[%s3356_s1 + $0x264] ss:$8 sps:$4 sm:$0xff]   ;;  %v2226_v20 = vld [vmem:[%s3356_s1 + $0x260] ss:$8 sps:$4 sm:$0xff]   ;;  %v150_v21 = vpack.c.bf16 %v52_v13, %v45_v12  ;;  %v152_v22 = vpack.c.bf16 %v54_v17, %v47_v16  ;;  %v44_v23 = vld [vmem:[%s3355_s0 + $0x70] sm:$0xff] }
  0x1e   :  { %949 = vmatpush1.bf16.msra.mxu1 %v2168_v28  ;;  %837 = vmatprep.subr.bf16.mxu0 %v2169_v29  ;;  %v51_v24 = vld [vmem:[%s3355_s0 + $0xa8] sm:$0xff]  ;;  %v46_v25 = vld [vmem:[%s3355_s0 + $0x80] sm:$0xff]  ;;  %v53_v26 = vld [vmem:[%s3355_s0 + $0xb8] sm:$0xff] }
  0x1f   :  { %950 = vmatprep.subr.bf16.mxu1 %v2171_v30  ;;  %v2231_v27 = vld [vmem:[%s3356_s1 + $0x254] ss:$8 sps:$4 sm:$0xff]   ;;  %v59_v28 = vld [vmem:[%s3355_s0 + $0xe8] sm:$0xff]  ;;  %v149_v29 = vpack.c.bf16 %v51_v24, %v44_v23  ;;  %v151_v30 = vpack.c.bf16 %v53_v26, %v46_v25  ;;  %v82_v49 = vld [vmem:[%s3355_s0 + $0x1a0] sm:$0xff] }
  0x20   :  { %v75_v48 = vld [vmem:[%s3355_s0 + $0x168] sm:$0xff]  ;;  %v2235_v50 = vld [vmem:[%s3356_s1 + $0x230] ss:$8 sps:$4 sm:$0xff]   ;;  %v86_v7 = vld [vmem:[%s3355_s0 + $0x1c0] sm:$0xff] }
  0x21   :  { %838 = vmatpush1.bf16.msra.mxu0 %v2173_v31  ;;  %v66_v31 = vld [vmem:[%s3355_s0 + $0x120] sm:$0xff]  ;;  %v166_v54 = vpack.c.bf16 %v82_v49, %v75_v48  ;;  %v72_v55 = vld [vmem:[%s3355_s0 + $0x150] sm:$0xff]  ;;  %v93_v8 = vld [vmem:[%s3355_s0 + $0x1f8] sm:$0xff] }
  0x22   :  { %951 = vmatpush1.bf16.msra.mxu1 %v2174_v32  ;;  %839 = vmatprep.subr.bf16.mxu0 %v2175_v33  ;;  %v61_v32 = vld [vmem:[%s3355_s0 + $0xf8] sm:$0xff]  ;;  %v68_v33 = vld [vmem:[%s3355_s0 + $0x130] sm:$0xff]  ;;  %v95_v10 = vld [vmem:[%s3355_s0 + $0x208] sm:$0xff]  ;;  %v170_v13 = vpack.c.bf16 %v93_v8, %v86_v7 }
  0x23   :  { %952 = vmatprep.subr.bf16.mxu1 %v2177_v34  ;;  %v2229_v34 = vld [vmem:[%s3356_s1 + $0x250] ss:$8 sps:$4 sm:$0xff]   ;;  %v103_v16 = vld [vmem:[%s3355_s0 + $0x248] sm:$0xff]  ;;  %v110_v17 = vld [vmem:[%s3355_s0 + $0x280] sm:$0xff] }
  0x24   :  { %v88_v9 = vld [vmem:[%s3355_s0 + $0x1d0] sm:$0xff]  ;;  %v101_v12 = vld [vmem:[%s3355_s0 + $0x238] sm:$0xff]  ;;  %v107_v24 = vld [vmem:[%s3355_s0 + $0x268] sm:$0xff] }
  0x25   :  { %840 = vmatpush2.bf16.msra.mxu0 %v2179_v35  ;;  %v2234_v35 = vld [vmem:[%s3356_s1 + $0x244] ss:$8 sps:$4 sm:$0xff]   ;;  %v100_v23 = vld [vmem:[%s3355_s0 + $0x230] sm:$0xff]  ;;  %v109_v26 = vld [vmem:[%s3355_s0 + $0x278] sm:$0xff] }
  0x26   :  { %953 = vmatpush2.bf16.msra.mxu1 %v2180_v36  ;;  %841 = vmatprep.subr.bf16.mxu0 %v2181_v37  ;;  %v157_v36 = vpack.c.bf16 %v66_v31, %v59_v28  ;;  %v159_v37 = vpack.c.bf16 %v68_v33, %v61_v32  ;;  %v102_v25 = vld [vmem:[%s3355_s0 + $0x240] sm:$0xff]  ;;  %v115_v28 = vld [vmem:[%s3355_s0 + $0x2a8] sm:$0xff]  ;;  %v117_v31 = vld [vmem:[%s3355_s0 + $0x2b8] sm:$0xff]  ;;  %v177_v33 = vpack.c.bf16 %v107_v24, %v100_v23 }
  0x27   :  { %954 = vmatprep.subr.bf16.mxu1 %v2183_v38  ;;  %v2232_v38 = vld [vmem:[%s3356_s1 + $0x240] ss:$8 sps:$4 sm:$0xff]   ;;  %v124_v32 = vld [vmem:[%s3355_s0 + $0x2f0] sm:$0xff] }
  0x28   :  { %v2259_v48 = vld [vmem:[%s3356_s1 + $0x2b0] ss:$8 sps:$4 sm:$0xff]  }
  0x29   :  { %842 = vmatpush2.bf16.msra.mxu0 %v2185_v39  ;;  %v58_v39 = vld [vmem:[%s3355_s0 + $0xe0] sm:$0xff] }
  0x2a   :  { %955 = vmatpush2.bf16.msra.mxu1 %v2186_v40  ;;  %843 = vmatprep.subr.bf16.mxu0 %v2187_v41  ;;  %v65_v40 = vld [vmem:[%s3355_s0 + $0x118] sm:$0xff]  ;;  %v60_v41 = vld [vmem:[%s3355_s0 + $0xf0] sm:$0xff] }
  0x2b   :  { %956 = vmatprep.subr.bf16.mxu1 %v2189_v42  ;;  %v67_v42 = vld [vmem:[%s3355_s0 + $0x128] sm:$0xff] }
  0x2c   :  { %v158_v47 = vpack.c.bf16 %v67_v42, %v60_v41  ;;  %v116_v41 = vld [vmem:[%s3355_s0 + $0x2b0] sm:$0xff]  ;;  %v123_v42 = vld [vmem:[%s3355_s0 + $0x2e8] sm:$0xff] }
  0x2d   :  { %844 = vmatpush2.bf16.msra.mxu0 %v2191_v43  ;;  %v2237_v43 = vld [vmem:[%s3356_s1 + $0x234] ss:$8 sps:$4 sm:$0xff]  }
  0x2e   :  { %957 = vmatpush2.bf16.msra.mxu1 %v2192_v44  ;;  %845 = vmatprep.subr.bf16.mxu0 %v2193_v45  ;;  %v73_v44 = vld [vmem:[%s3355_s0 + $0x158] sm:$0xff]  ;;  %v80_v45 = vld [vmem:[%s3355_s0 + $0x190] sm:$0xff] }
  0x2f   :  { %958 = vmatprep.subr.bf16.mxu1 %v2195_v46  ;;  %v156_v46 = vpack.c.bf16 %v65_v40, %v58_v39  ;;  %v114_v39 = vld [vmem:[%s3355_s0 + $0x2a0] sm:$0xff]  ;;  %v121_v40 = vld [vmem:[%s3355_s0 + $0x2d8] sm:$0xff] }
  0x30   :  { %v184_v49 = vpack.c.bf16 %v121_v40, %v114_v39 }
  0x31   :  { %846 = vmatpush2.bf16.msra.mxu0 %v2197_v51  ;;  %v2240_v51 = vld [vmem:[%s3356_s1 + $0x224] ss:$8 sps:$4 sm:$0xff]  }
  0x32   :  { %959 = vmatpush2.bf16.msra.mxu1 %v2198_v52  ;;  %847 = vmatprep.subr.bf16.mxu0 %v2199_v53  ;;  %v2238_v52 = vld [vmem:[%s3356_s1 + $0x220] ss:$8 sps:$4 sm:$0xff]   ;;  %v164_v53 = vpack.c.bf16 %v80_v45, %v73_v44  ;;  %v129_v44 = vld [vmem:[%s3355_s0 + $0x318] sm:$0xff]  ;;  %v136_v45 = vld [vmem:[%s3355_s0 + $0x350] sm:$0xff] }
  0x33   :  { %960 = vmatprep.subr.bf16.mxu1 %v2201_v56  ;;  %v79_v56 = vld [vmem:[%s3355_s0 + $0x188] sm:$0xff] }
  0x35   :  { %848 = vmatpush2.bf16.msra.mxu0 %v2203_v57  ;;  %v74_v57 = vld [vmem:[%s3355_s0 + $0x160] sm:$0xff] }
  0x36   :  { %961 = vmatpush2.bf16.msra.mxu1 %v2204_v58  ;;  %849 = vmatprep.subr.bf16.mxu0 %v2205_v59  ;;  %v81_v58 = vld [vmem:[%s3355_s0 + $0x198] sm:$0xff] }
  0x37   :  { %962 = vmatprep.subr.bf16.mxu1 %v2207_v60  ;;  %v2243_v59 = vld [vmem:[%s3356_s1 + $0x214] ss:$8 sps:$4 sm:$0xff]   ;;  %v87_v60 = vld [vmem:[%s3355_s0 + $0x1c8] sm:$0xff] }
  0x39   :  { %850 = vmatpush2.bf16.msra.mxu0 %v2209_v61  ;;  %v163_v61 = vpack.c.bf16 %v79_v56, %v72_v55 }
  0x3a   :  { %963 = vmatpush2.bf16.msra.mxu1 %v2210_v62  ;;  %851 = vmatprep.subr.bf16.mxu0 %v2211_v63  ;;  %v165_v62 = vpack.c.bf16 %v81_v58, %v74_v57  ;;  %v94_v63 = vld [vmem:[%s3355_s0 + $0x200] sm:$0xff] }
  0x3b   :  { %964 = vmatprep.subr.bf16.mxu1 %v2213_v0  ;;  %v89_v0 = vld [vmem:[%s3355_s0 + $0x1d8] sm:$0xff] }
  0x3d   :  { %852 = vmatpush2.bf16.msra.mxu0 %v2215_v1  ;;  %v96_v1 = vld [vmem:[%s3355_s0 + $0x210] sm:$0xff] }
  0x3e   :  { %965 = vmatpush2.bf16.msra.mxu1 %v2216_v2  ;;  %853 = vmatprep.subr.bf16.mxu0 %v2217_v3  ;;  %v2241_v2 = vld [vmem:[%s3356_s1 + $0x210] ss:$8 sps:$4 sm:$0xff]   ;;  %v2246_v3 = vld [vmem:[%s3356_s1 + $0x204] ss:$8 sps:$4 sm:$0xff]  }
  0x3f   :  { %966 = vmatprep.subr.bf16.mxu1 %v2219_v4  ;;  %v171_v4 = vpack.c.bf16 %v94_v63, %v87_v60 }
  0x41   :  { %854 = vmatpush2.bf16.msra.mxu0 %v2221_v5  ;;  %v173_v5 = vpack.c.bf16 %v96_v1, %v89_v0 }
  0x42   :  { %967 = vmatpush2.bf16.msra.mxu1 %v2222_v6  ;;  %1049 = vmatprep.subr.bf16.mxu0 %v2225_v11  ;;  %v2244_v6 = vld [vmem:[%s3356_s1 + $0x200] ss:$8 sps:$4 sm:$0xff]  }
  0x43   :  { %2093 = vmatprep.subr.bf16.mxu1 %v2225_v11  ;;  %v2249_v11 = vld [vmem:[%s3356_s1 + $0x2f4] ss:$8 sps:$4 sm:$0xff]  }
  0x44   :  { %856 = vmatmul.mubr.bf16.vlgmr.msra.gmra.mxu0 %v142_v14  ;;  %v172_v14 = vpack.c.bf16 %v95_v10, %v88_v9 }
  0x45   :  { %969 = vmatmul.mubr.bf16.vlgmr.msra.gmra.mxu1 %v144_v15  ;;  %1050 = vmatpush1.bf16.msra.mxu0 %v2223_v18  ;;  %v108_v15 = vld [vmem:[%s3355_s0 + $0x270] sm:$0xff] }
  0x46   :  { %2109 = vmatpush1.bf16.msra.mxu1 %v2223_v18  ;;  %1051 = vmatprep.subr.bf16.mxu0 %v2228_v19  ;;  %v2247_v18 = vld [vmem:[%s3356_s1 + $0x2f0] ss:$8 sps:$4 sm:$0xff]  }
  0x47   :  { %2094 = vmatprep.subr.bf16.mxu1 %v2228_v19  ;;  %865 = vmatprep.mubr.bf16.mxu0 %v150_v21  ;;  %v2252_v19 = vld [vmem:[%s3356_s1 + $0x2e4] ss:$8 sps:$4 sm:$0xff]   ;;  %v180_v21 = vpack.c.bf16 %v110_v17, %v103_v16 }
  0x48   :  { %978 = vmatprep.mubr.bf16.mxu1 %v152_v22  ;;  %v2250_v22 = vld [vmem:[%s3356_s1 + $0x2e0] ss:$8 sps:$4 sm:$0xff]  }
  0x49   :  { %1052 = vmatpush1.bf16.msra.mxu0 %v2226_v20 }
  0x4a   :  { %2110 = vmatpush1.bf16.msra.mxu1 %v2226_v20  ;;  %1053 = vmatprep.subr.bf16.mxu0 %v2231_v27  ;;  %v178_v20 = vpack.c.bf16 %v108_v15, %v101_v12 }
  0x4b   :  { %2095 = vmatprep.subr.bf16.mxu1 %v2231_v27  ;;  %v2255_v27 = vld [vmem:[%s3356_s1 + $0x2d4] ss:$8 sps:$4 sm:$0xff]  }
  0x4c   :  { %866 = vmatmul.mubr.bf16.gmra.mxu0 %v149_v29  ;;  %v2253_v29 = vld [vmem:[%s3356_s1 + $0x2d0] ss:$8 sps:$4 sm:$0xff]  }
  0x4d   :  { %979 = vmatmul.mubr.bf16.gmra.mxu1 %v151_v30  ;;  %1054 = vmatpush1.bf16.msra.mxu0 %v2229_v34  ;;  %v122_v30 = vld [vmem:[%s3355_s0 + $0x2e0] sm:$0xff] }
  0x4e   :  { %2111 = vmatpush1.bf16.msra.mxu1 %v2229_v34  ;;  %1055 = vmatprep.subr.bf16.mxu0 %v2234_v35  ;;  %v179_v34 = vpack.c.bf16 %v109_v26, %v102_v25 }
  0x4f   :  { %2096 = vmatprep.subr.bf16.mxu1 %v2234_v35  ;;  %875 = vmatprep.mubr.bf16.mxu0 %v157_v36  ;;  %v2258_v35 = vld [vmem:[%s3356_s1 + $0x2c4] ss:$8 sps:$4 sm:$0xff]   ;;  %v2256_v36 = vld [vmem:[%s3356_s1 + $0x2c0] ss:$8 sps:$4 sm:$0xff]  }
  0x50   :  { %988 = vmatprep.mubr.bf16.mxu1 %v159_v37  ;;  %v185_v37 = vpack.c.bf16 %v122_v30, %v115_v28 }
  0x51   :  { %1056 = vmatpush1.bf16.msra.mxu0 %v2232_v38 }
  0x52   :  { %2112 = vmatpush1.bf16.msra.mxu1 %v2232_v38  ;;  %1057 = vmatprep.subr.bf16.mxu0 %v2237_v43  ;;  %v187_v38 = vpack.c.bf16 %v124_v32, %v117_v31 }
  0x53   :  { %2097 = vmatprep.subr.bf16.mxu1 %v2237_v43  ;;  %v2261_v43 = vld [vmem:[%s3356_s1 + $0x2b4] ss:$8 sps:$4 sm:$0xff]  }
  0x54   :  { %876 = vmatmul.mubr.bf16.gmra.mxu0 %v156_v46  ;;  %v131_v46 = vld [vmem:[%s3355_s0 + $0x328] sm:$0xff] }
  0x55   :  { %989 = vmatmul.mubr.bf16.gmra.mxu1 %v158_v47  ;;  %1058 = vmatpush1.bf16.msra.mxu0 %v2235_v50  ;;  %v138_v47 = vld [vmem:[%s3355_s0 + $0x360] sm:$0xff] }
  0x56   :  { %2113 = vmatpush1.bf16.msra.mxu1 %v2235_v50  ;;  %1059 = vmatprep.subr.bf16.mxu0 %v2240_v51  ;;  %v186_v50 = vpack.c.bf16 %v123_v42, %v116_v41 }
  0x57   :  { %2098 = vmatprep.subr.bf16.mxu1 %v2240_v51  ;;  %885 = vmatprep.mubr.bf16.mxu0 %v164_v53  ;;  %v2264_v51 = vld [vmem:[%s3356_s1 + $0x2a4] ss:$8 sps:$4 sm:$0xff]  }
  0x58   :  { %998 = vmatprep.mubr.bf16.mxu1 %v166_v54 }
  0x59   :  { %1060 = vmatpush1.bf16.msra.mxu0 %v2238_v52 }
  0x5a   :  { %2114 = vmatpush1.bf16.msra.mxu1 %v2238_v52  ;;  %1061 = vmatprep.subr.bf16.mxu0 %v2243_v59 }
  0x5b   :  { %2099 = vmatprep.subr.bf16.mxu1 %v2243_v59 }
  0x5c   :  { %886 = vmatmul.mubr.bf16.gmra.mxu0 %v163_v61 }
  0x5d   :  { %999 = vmatmul.mubr.bf16.gmra.mxu1 %v165_v62  ;;  %1062 = vmatpush1.bf16.msra.mxu0 %v2241_v2 }
  0x5e   :  { %2115 = vmatpush1.bf16.msra.mxu1 %v2241_v2  ;;  %1063 = vmatprep.subr.bf16.mxu0 %v2246_v3 }
  0x5f   :  { %2100 = vmatprep.subr.bf16.mxu1 %v2246_v3  ;;  %895 = vmatprep.mubr.bf16.mxu0 %v171_v4 }
  0x60   :  { %1008 = vmatprep.mubr.bf16.mxu1 %v173_v5 }
  0x61   :  { %1064 = vmatpush1.bf16.msra.mxu0 %v2244_v6 }
  0x62   :  { %2116 = vmatpush1.bf16.msra.mxu1 %v2244_v6  ;;  %1065 = vmatprep.subr.bf16.mxu0 %v2249_v11 }
  0x63   :  { %2101 = vmatprep.subr.bf16.mxu1 %v2249_v11 }
  0x64   :  { %896 = vmatmul.mubr.bf16.gmra.mxu0 %v170_v13 }
  0x65   :  { %1009 = vmatmul.mubr.bf16.gmra.mxu1 %v172_v14  ;;  %1066 = vmatpush2.bf16.msra.mxu0 %v2247_v18 }
  0x66   :  { %2117 = vmatpush2.bf16.msra.mxu1 %v2247_v18  ;;  %1067 = vmatprep.subr.bf16.mxu0 %v2252_v19 }
  0x67   :  { %2102 = vmatprep.subr.bf16.mxu1 %v2252_v19  ;;  %905 = vmatprep.mubr.bf16.mxu0 %v178_v20 }
  0x68   :  { %1018 = vmatprep.mubr.bf16.mxu1 %v180_v21 }
  0x69   :  { %1068 = vmatpush2.bf16.msra.mxu0 %v2250_v22 }
  0x6a   :  { %2118 = vmatpush2.bf16.msra.mxu1 %v2250_v22  ;;  %1069 = vmatprep.subr.bf16.mxu0 %v2255_v27 }
  0x6b   :  { %2103 = vmatprep.subr.bf16.mxu1 %v2255_v27 }
  0x6c   :  { %906 = vmatmul.mubr.bf16.gmra.mxu0 %v177_v33 }
  0x6d   :  { %1019 = vmatmul.mubr.bf16.gmra.mxu1 %v179_v34  ;;  %1070 = vmatpush2.bf16.msra.mxu0 %v2253_v29 }
  0x6e   :  { %2119 = vmatpush2.bf16.msra.mxu1 %v2253_v29  ;;  %1071 = vmatprep.subr.bf16.mxu0 %v2258_v35 }
  0x6f   :  { %2104 = vmatprep.subr.bf16.mxu1 %v2258_v35  ;;  %915 = vmatprep.mubr.bf16.mxu0 %v185_v37 }
  0x70   :  { %1028 = vmatprep.mubr.bf16.mxu1 %v187_v38 }
  0x71   :  { %1072 = vmatpush2.bf16.msra.mxu0 %v2256_v36 }
  0x72   :  { %2120 = vmatpush2.bf16.msra.mxu1 %v2256_v36  ;;  %1073 = vmatprep.subr.bf16.mxu0 %v2261_v43 }
  0x73   :  { %2105 = vmatprep.subr.bf16.mxu1 %v2261_v43 }
  0x74   :  { %14 = vsyncpa [#allocation4], 0  ;;  %v192_v52 = vpack.c.bf16 %v136_v45, %v129_v44  ;;  %v194_v53 = vpack.c.bf16 %v138_v47, %v131_v46  ;;  %916 = vmatmul.mubr.bf16.gmra.mxu0 %v184_v49  ;;  %v2262_v54 = vld [vmem:[%s3356_s1 + $0x2a0] ss:$8 sps:$4 sm:$0xff]   ;;  %v128_v55 = vld [vmem:[%s3355_s0 + $0x310] sm:$0xff]  ;;  %vm798_vm0 = vcmask 130048  }
  0x75   :  { %1029 = vmatmul.mubr.bf16.gmra.mxu1 %v186_v50  ;;  %1074 = vmatpush2.bf16.msra.mxu0 %v2259_v48  ;;  %v135_v56 = vld [vmem:[%s3355_s0 + $0x348] sm:$0xff]  ;;  %v130_v57 = vld [vmem:[%s3355_s0 + $0x320] sm:$0xff]  ;;  %v137_v58 = vld [vmem:[%s3355_s0 + $0x358] sm:$0xff] }
  0x76   :  { %2121 = vmatpush2.bf16.msra.mxu1 %v2259_v48  ;;  %1075 = vmatprep.subr.bf16.mxu0 %v2264_v51  ;;  %v2267_v59 = vld [vmem:[%s3356_s1 + $0x294] ss:$8 sps:$4 sm:$0xff]   ;;  %v35_v60 = vld [vmem:[%s3355_s0 + $0x28] sm:$0xff]  ;;  %v191_v61 = vpack.c.bf16 %v135_v56, %v128_v55  ;;  %v193_v62 = vpack.c.bf16 %v137_v58, %v130_v57  ;;  %v42_v63 = vld [vmem:[%s3355_s0 + $0x60] sm:$0xff] }
  0x77   :  { %2106 = vmatprep.subr.bf16.mxu1 %v2264_v51  ;;  %925 = vmatprep.mubr.bf16.mxu0 %v192_v52  ;;  %v91_v0 = vld [vmem:[%s3355_s0 + $0x1e8] sm:$0xff]  ;;  %v98_v1 = vld [vmem:[%s3355_s0 + $0x220] sm:$0xff]  ;;  %v2265_v2 = vld [vmem:[%s3356_s1 + $0x290] ss:$8 sps:$4 sm:$0xff]   ;;  %v147_v4 = vpack.c.bf16 %v42_v63, %v35_v60  ;;  %v2376_v51 = vmov 0  }
  0x78   :  { %1038 = vmatprep.mubr.bf16.mxu1 %v194_v53  ;;  %v2270_v3 = vld [vmem:[%s3356_s1 + $0x284] ss:$8 sps:$4 sm:$0xff]   ;;  %v175_v5 = vpack.c.bf16 %v98_v1, %v91_v0  ;;  %v2268_v6 = vld [vmem:[%s3356_s1 + $0x280] ss:$8 sps:$4 sm:$0xff]   ;;  %v41_v8 = vld [vmem:[%s3355_s0 + $0x58] sm:$0xff] }
  0x79   :  { %1076 = vmatpush2.bf16.msra.mxu0 %v2262_v54  ;;  %v34_v7 = vld [vmem:[%s3355_s0 + $0x20] sm:$0xff]  ;;  %v97_v10 = vld [vmem:[%s3355_s0 + $0x218] sm:$0xff]  ;;  %v56_v13 = vld [vmem:[%s3355_s0 + $0xd0] sm:$0xff] }
  0x7a   :  { %2122 = vmatpush2.bf16.msra.mxu1 %v2262_v54  ;;  %1077 = vmatprep.subr.bf16.mxu0 %v2267_v59  ;;  %v90_v9 = vld [vmem:[%s3355_s0 + $0x1e0] sm:$0xff]  ;;  %v49_v12 = vld [vmem:[%s3355_s0 + $0x98] sm:$0xff]  ;;  %v112_v15 = vld [vmem:[%s3355_s0 + $0x290] sm:$0xff]  ;;  %v146_v16 = vpack.c.bf16 %v41_v8, %v34_v7 }
  0x7b   :  { %2107 = vmatprep.subr.bf16.mxu1 %v2267_v59  ;;  %v2273_v11 = vld [vmem:[%s3356_s1 + $0x304] ss:$8 sps:$4 sm:$0xff]   ;;  %v105_v14 = vld [vmem:[%s3355_s0 + $0x258] sm:$0xff]  ;;  %v174_v17 = vpack.c.bf16 %v97_v10, %v90_v9  ;;  %v2271_v18 = vld [vmem:[%s3356_s1 + $0x300] ss:$8 sps:$4 sm:$0xff]   ;;  %v154_v19 = vpack.c.bf16 %v56_v13, %v49_v12 }
  0x7c   :  { %926 = vmatmul.mubr.bf16.gmra.mxu0 %v191_v61  ;;  %v182_v20 = vpack.c.bf16 %v112_v15, %v105_v14  ;;  %v48_v21 = vld [vmem:[%s3355_s0 + $0x90] sm:$0xff]  ;;  %v55_v22 = vld [vmem:[%s3355_s0 + $0xc8] sm:$0xff]  ;;  %v70_v26 = vld [vmem:[%s3355_s0 + $0x140] sm:$0xff] }
  0x7d   :  { %1039 = vmatmul.mubr.bf16.gmra.mxu1 %v193_v62  ;;  %1078 = vmatpush2.bf16.msra.mxu0 %v2265_v2  ;;  %v104_v23 = vld [vmem:[%s3355_s0 + $0x250] sm:$0xff]  ;;  %v111_v24 = vld [vmem:[%s3355_s0 + $0x288] sm:$0xff]  ;;  %v126_v28 = vld [vmem:[%s3355_s0 + $0x300] sm:$0xff]  ;;  %v153_v29 = vpack.c.bf16 %v55_v22, %v48_v21 }
  0x7e   :  { %2123 = vmatpush2.bf16.msra.mxu1 %v2265_v2  ;;  %1079 = vmatprep.subr.bf16.mxu0 %v2270_v3  ;;  %v63_v25 = vld [vmem:[%s3355_s0 + $0x108] sm:$0xff]  ;;  %v181_v30 = vpack.c.bf16 %v111_v24, %v104_v23  ;;  %v62_v33 = vld [vmem:[%s3355_s0 + $0x100] sm:$0xff]  ;;  %v69_v34 = vld [vmem:[%s3355_s0 + $0x138] sm:$0xff] }
  0x7f   :  { %2108 = vmatprep.subr.bf16.mxu1 %v2270_v3  ;;  %1081 = vmatprep.mubr.bf16.mxu0 %v147_v4  ;;  %v119_v27 = vld [vmem:[%s3355_s0 + $0x2c8] sm:$0xff]  ;;  %v161_v31 = vpack.c.bf16 %v70_v26, %v63_v25  ;;  %v118_v35 = vld [vmem:[%s3355_s0 + $0x2c0] sm:$0xff]  ;;  %v125_v36 = vld [vmem:[%s3355_s0 + $0x2f8] sm:$0xff]  ;;  %v160_v41 = vpack.c.bf16 %v69_v34, %v62_v33 }
  0x80   :  { %1121 = vmatprep.mubr.bf16.mxu1 %v175_v5  ;;  %v189_v32 = vpack.c.bf16 %v126_v28, %v119_v27  ;;  %v77_v37 = vld [vmem:[%s3355_s0 + $0x178] sm:$0xff]  ;;  %v84_v38 = vld [vmem:[%s3355_s0 + $0x1b0] sm:$0xff]  ;;  %v188_v42 = vpack.c.bf16 %v125_v36, %v118_v35  ;;  %v83_v46 = vld [vmem:[%s3355_s0 + $0x1a8] sm:$0xff]  ;;  %v298_v28 = vlaneseq }
  0x81   :  { %1080 = vmatpush2.bf16.msra.mxu0 %v2268_v6  ;;  %v133_v39 = vld [vmem:[%s3355_s0 + $0x338] sm:$0xff]  ;;  %v140_v40 = vld [vmem:[%s3355_s0 + $0x370] sm:$0xff]  ;;  %v168_v43 = vpack.c.bf16 %v84_v38, %v77_v37  ;;  %v139_v48 = vld [vmem:[%s3355_s0 + $0x368] sm:$0xff] }
  0x82   :  { %2124 = vmatpush2.bf16.msra.mxu1 %v2268_v6  ;;  %v196_v44 = vpack.c.bf16 %v140_v40, %v133_v39  ;;  %v76_v45 = vld [vmem:[%s3355_s0 + $0x170] sm:$0xff]  ;;  %v43_v53 = vld [vmem:[%s3355_s0 + $0x68] sm:$0xff]  ;;  %v50_v55 = vld [vmem:[%s3355_s0 + $0xa0] sm:$0xff] }
  0x83   :  { %1176 = vmatprep.subr.bf16.mxu1 %v2273_v11  ;;  %v132_v47 = vld [vmem:[%s3355_s0 + $0x330] sm:$0xff]  ;;  %v167_v49 = vpack.c.bf16 %v83_v46, %v76_v45  ;;  %v57_v56 = vld [vmem:[%s3355_s0 + $0xd8] sm:$0xff]  ;;  %v71_v59 = vld [vmem:[%s3355_s0 + $0x148] sm:$0xff] }
  0x84   :  { %1082 = vmatmul.mubr.bf16.vlgmr.msra.gmra.mxu0 %v146_v16  ;;  %v195_v50 = vpack.c.bf16 %v139_v48, %v132_v47  ;;  %v36_v52 = vld [vmem:[%s3355_s0 + $0x30] sm:$0xff]  ;;  %v155_v57 = vpack.c.bf16 %v57_v56, %v50_v55  ;;  %v78_v61 = vld [vmem:[%s3355_s0 + $0x180] sm:$0xff]  ;;  %v85_v62 = vld [vmem:[%s3355_s0 + $0x1b8] sm:$0xff] }
  0x85   :  { %1122 = vmatmul.mubr.bf16.vlgmr.msra.gmra.mxu1 %v174_v17  ;;  %1091 = vmatprep.mubr.bf16.mxu0 %v154_v19  ;;  %v148_v54 = vpack.c.bf16 %v43_v53, %v36_v52  ;;  %v64_v58 = vld [vmem:[%s3355_s0 + $0x110] sm:$0xff]  ;;  %v169_v63 = vpack.c.bf16 %v85_v62, %v78_v61  ;;  %v99_v1 = vld [vmem:[%s3355_s0 + $0x228] sm:$0xff]  ;;  %v106_v3 = vld [vmem:[%s3355_s0 + $0x260] sm:$0xff] }
  0x86   :  { %1177 = vmatpush1.bf16.msra.mxu1 %v2271_v18  ;;  %1131 = vmatprep.mubr.bf16.mxu1 %v182_v20  ;;  %v162_v60 = vpack.c.bf16 %v71_v59, %v64_v58  ;;  %v92_v0 = vld [vmem:[%s3355_s0 + $0x1f0] sm:$0xff]  ;;  %v113_v4 = vld [vmem:[%s3355_s0 + $0x298] sm:$0xff]  ;;  %v127_v7 = vld [vmem:[%s3355_s0 + $0x308] sm:$0xff] }
  0x87   :  { %v176_v2 = vpack.c.bf16 %v99_v1, %v92_v0  ;;  %v183_v5 = vpack.c.bf16 %v113_v4, %v106_v3  ;;  %v120_v6 = vld [vmem:[%s3355_s0 + $0x2d0] sm:$0xff]  ;;  %v2274_v9 = vld [vmem:[%s3358_s3 + $0x78] sm:$0xff]   ;;  %v134_v11 = vld [vmem:[%s3355_s0 + $0x340] sm:$0xff] }
  0x88   :  { %v190_v8 = vpack.c.bf16 %v127_v7, %v120_v6  ;;  %v2275_v10 = vld [vmem:[%s3358_s3 + $0x38] sm:$0xff]   ;;  %2029 = vmatprep.subr.bf16.mxu0 %v2274_v9  ;;  %v2276_v13 = vld [vmem:[%s3358_s3 + $0x70] sm:$0xff]   ;;  %v2278_v16 = vld [vmem:[%s3358_s3 + $0x68] sm:$0xff]  }
  0x89   :  { %2030 = vmatpush3.bf16.msra.mxu0 %v2275_v10  ;;  %v141_v12 = vld [vmem:[%s3355_s0 + $0x378] sm:$0xff]  ;;  %v2277_v14 = vld [vmem:[%s3358_s3 + $0x30] sm:$0xff]   ;;  %v2279_v17 = vld [vmem:[%s3358_s3 + $0x28] sm:$0xff]  }
  0x8a   :  { %2031 = vmatprep.subr.bf16.mxu0 %v2276_v13  ;;  %v197_v15 = vpack.c.bf16 %v141_v12, %v134_v11  ;;  %v2280_v18 = vld [vmem:[%s3358_s3 + $0x60] sm:$0xff]   ;;  %v2282_v20 = vld [vmem:[%s3358_s3 + $0x58] sm:$0xff]   ;;  %v2284_v22 = vld [vmem:[%s3358_s3 + $0x50] sm:$0xff]  }
  0x8b   :  { %v2281_v19 = vld [vmem:[%s3358_s3 + $0x20] sm:$0xff]   ;;  %v2283_v21 = vld [vmem:[%s3358_s3 + $0x18] sm:$0xff]   ;;  %v2285_v23 = vld [vmem:[%s3358_s3 + $0x10] sm:$0xff]  }
  0x8c   :  { %1092 = vmatmul.mubr.bf16.gmra.mxu0 %v153_v29  ;;  %v2286_v24 = vld [vmem:[%s3358_s3 + $0x48] sm:$0xff]   ;;  %v2288_v26 = vld [vmem:[%s3358_s3 + $0x40] sm:$0xff]   ;;  %v299_v29 = vshrl.u32 %v298_v28, 7 }
  0x8d   :  { %1132 = vmatmul.mubr.bf16.gmra.mxu1 %v181_v30  ;;  %1101 = vmatprep.mubr.bf16.mxu0 %v161_v31  ;;  %v2287_v25 = vld [vmem:[%s3358_s3 + $0x8] sm:$0xff]   ;;  %v2289_v27 = vld [vmem:[%s3358_s3] sm:$0xff]  }
  0x8e   :  { %1141 = vmatprep.mubr.bf16.mxu1 %v189_v32  ;;  %2032 = vmatpush3.bf16.msra.mxu0 %v2277_v14  ;;  %v300_v30 = vsub.s32 0, %v299_v29  ;;  %v296_v31 = vld [vmem:[%s3357_s2] sm:$0x3]  ;;  %v304_v32 = vsub.s32 1, %v299_v29 }
  0x8f   :  { %2033 = vmatprep.subr.bf16.mxu0 %v2278_v16 }
  0x90   :  { %v3110_v33 = vrot.slane %v296_v31, %v300_v30  ;;  %v3112_v34 = vrot.slane %v296_v31, %v304_v32 }
  0x92   :  { %2034 = vmatpush3.bf16.msra.mxu0 %v2279_v17 }
  0x93   :  { %2035 = vmatprep.subr.bf16.mxu0 %v2280_v18 }
  0x94   :  { %1102 = vmatmul.mubr.bf16.gmra.mxu0 %v160_v41 }
  0x95   :  { %1142 = vmatmul.mubr.bf16.gmra.mxu1 %v188_v42  ;;  %1111 = vmatprep.mubr.bf16.mxu0 %v168_v43 }
  0x96   :  { %1151 = vmatprep.mubr.bf16.mxu1 %v196_v44  ;;  %2036 = vmatpush3.bf16.msra.mxu0 %v2281_v19 }
  0x97   :  { %2037 = vmatprep.subr.bf16.mxu0 %v2282_v20 }
  0x9a   :  { %2038 = vmatpush3.bf16.msra.mxu0 %v2283_v21 }
  0x9b   :  { %2039 = vmatprep.subr.bf16.mxu0 %v2284_v22 }
  0x9c   :  { %1112 = vmatmul.mubr.bf16.gmra.mxu0 %v167_v49 }
  0x9d   :  { %1152 = vmatmul.mubr.bf16.gmra.mxu1 %v195_v50 }
  0x9e   :  { %1194 = vmatprep.mubr.bf16.mxu1 %v2376_v51  ;;  %2040 = vmatpush3.bf16.msra.mxu0 %v2285_v23 }
  0x9f   :  { %2041 = vmatprep.subr.bf16.mxu0 %v2286_v24 }
  0xa2   :  { %2042 = vmatpush3.bf16.msra.mxu0 %v2287_v25 }
  0xa3   :  { %2043 = vmatprep.subr.bf16.mxu0 %v2288_v26 }
  0xa5   :  { %1986 = vmatmul.mubr.msk.bf16.vlgmr.msra.gmra.mxu1 %vm798_vm0, %v148_v54 }
  0xa6   :  { %1204 = vmatprep.mubr.bf16.mxu1 %v2376_v51  ;;  %2044 = vmatpush3.bf16.msra.mxu0 %v2289_v27 }
  0xad   :  { %1987 = vmatmul.mubr.msk.bf16.gmra.mxu1 %vm798_vm0, %v155_v57 }
  0xae   :  { %1214 = vmatprep.mubr.bf16.mxu1 %v2376_v51 }
  0xb5   :  { %1988 = vmatmul.mubr.msk.bf16.gmra.mxu1 %vm798_vm0, %v162_v60 }
  0xb6   :  { %1224 = vmatprep.mubr.bf16.mxu1 %v2376_v51 }
  0xbd   :  { %1989 = vmatmul.mubr.msk.bf16.gmra.mxu1 %vm798_vm0, %v169_v63 }
  0xbe   :  { %1234 = vmatprep.mubr.bf16.mxu1 %v2376_v51 }
  0xc5   :  { %1990 = vmatmul.mubr.msk.bf16.gmra.mxu1 %vm798_vm0, %v176_v2 }
  0xc6   :  { %1244 = vmatprep.mubr.bf16.mxu1 %v2376_v51 }
  0xcd   :  { %1991 = vmatmul.mubr.msk.bf16.gmra.mxu1 %vm798_vm0, %v183_v5 }
  0xce   :  { %1254 = vmatprep.mubr.bf16.mxu1 %v2376_v51 }
  0xd5   :  { %1992 = vmatmul.mubr.msk.bf16.gmra.mxu1 %vm798_vm0, %v190_v8 }
  0xd6   :  { %1264 = vmatprep.mubr.bf16.mxu1 %v2376_v51 }
  0xdd   :  { %1993 = vmatmul.mubr.msk.bf16.gmra.mxu1 %vm798_vm0, %v197_v15 }
 0x104   :  { %v857_v35 = vpop.f32.mrf.mxu0 }
 0x105   :  { %v970_v36 = vpop.f32.mrf.mxu1  ;;  %v858_v37 = vadd.f32 %v857_v35, %v3110_v33 }
 0x106   :  { %v859_v38 = vpop.f32.mrf.mxu0 }
 0x107   :  { %v972_v39 = vpop.f32.mrf.mxu1  ;;  %v3115_v40 = vadd.f32 %v970_v36, %v858_v37  ;;  %v860_v41 = vadd.f32 %v859_v38, %v3112_v34 }
 0x108   :  { %v3118_v42 = vpop.f32.mrf.mxu0 }
 0x109   :  { %v3120_v43 = vpop.f32.mrf.mxu1  ;;  %v3122_v44 = vadd.f32 %v972_v39, %v860_v41 }
 0x10a   :  { %v3124_v45 = vpop.f32.mrf.mxu0 }
 0x10b   :  { %v3126_v46 = vpop.f32.mrf.mxu1 }
 0x10c   :  { %v867_v47 = vpop.f32.mrf.mxu0 }
 0x10d   :  { %v980_v48 = vpop.f32.mrf.mxu1  ;;  %v868_v49 = vadd.f32 %v867_v47, %v3110_v33 }
 0x10e   :  { %v869_v50 = vpop.f32.mrf.mxu0 }
 0x10f   :  { %v982_v51 = vpop.f32.mrf.mxu1  ;;  %v3129_v52 = vadd.f32 %v980_v48, %v868_v49  ;;  %v870_v53 = vadd.f32 %v869_v50, %v3112_v34 }
 0x110   :  { %v3132_v54 = vpop.f32.mrf.mxu0 }
 0x111   :  { %v3134_v55 = vpop.f32.mrf.mxu1  ;;  %v3136_v56 = vadd.f32 %v982_v51, %v870_v53 }
 0x112   :  { %v3138_v57 = vpop.f32.mrf.mxu0 }
 0x113   :  { %v3140_v58 = vpop.f32.mrf.mxu1 }
 0x114   :  { %v877_v59 = vpop.f32.mrf.mxu0 }
 0x115   :  { %v990_v60 = vpop.f32.mrf.mxu1  ;;  %v878_v61 = vadd.f32 %v877_v59, %v3110_v33 }
 0x116   :  { %v879_v62 = vpop.f32.mrf.mxu0 }
 0x117   :  { %v992_v63 = vpop.f32.mrf.mxu1  ;;  %v3143_v0 = vadd.f32 %v990_v60, %v878_v61  ;;  %v880_v1 = vadd.f32 %v879_v62, %v3112_v34 }
 0x118   :  { %v3146_v2 = vpop.f32.mrf.mxu0 }
 0x119   :  { %v3148_v3 = vpop.f32.mrf.mxu1  ;;  %v3150_v4 = vadd.f32 %v992_v63, %v880_v1 }
 0x11a   :  { %v3152_v5 = vpop.f32.mrf.mxu0 }
 0x11b   :  { %v3154_v6 = vpop.f32.mrf.mxu1 }
 0x11c   :  { %v887_v7 = vpop.f32.mrf.mxu0 }
 0x11d   :  { %v1000_v8 = vpop.f32.mrf.mxu1  ;;  %v888_v9 = vadd.f32 %v887_v7, %v3110_v33 }
 0x11e   :  { %v889_v10 = vpop.f32.mrf.mxu0 }
 0x11f   :  { %v1002_v11 = vpop.f32.mrf.mxu1  ;;  %v3157_v12 = vadd.f32 %v1000_v8, %v888_v9  ;;  %v890_v13 = vadd.f32 %v889_v10, %v3112_v34 }
 0x120   :  { %v3160_v14 = vpop.f32.mrf.mxu0 }
 0x121   :  { %v3162_v15 = vpop.f32.mrf.mxu1  ;;  %v3164_v16 = vadd.f32 %v1002_v11, %v890_v13 }
 0x122   :  { %v3166_v17 = vpop.f32.mrf.mxu0 }
 0x123   :  { %v3168_v18 = vpop.f32.mrf.mxu1 }
 0x124   :  { %v897_v19 = vpop.f32.mrf.mxu0 }
 0x125   :  { %v1010_v20 = vpop.f32.mrf.mxu1  ;;  %v898_v21 = vadd.f32 %v897_v19, %v3110_v33 }
 0x126   :  { %v899_v22 = vpop.f32.mrf.mxu0 }
 0x127   :  { %v1012_v23 = vpop.f32.mrf.mxu1  ;;  %v1011_v24 = vadd.f32 %v1010_v20, %v898_v21  ;;  %v900_v25 = vadd.f32 %v899_v22, %v3112_v34 }
 0x128   :  { %v901_v26 = vpop.f32.mrf.mxu0 }
 0x129   :  { %v1014_v27 = vpop.f32.mrf.mxu1  ;;  %v1013_v28 = vadd.f32 %v1012_v23, %v900_v25 }
 0x12a   :  { %v3172_v29 = vpop.f32.mrf.mxu0 }
 0x12b   :  { %v3174_v30 = vpop.f32.mrf.mxu1 }
 0x12c   :  { %v907_v31 = vpop.f32.mrf.mxu0 }
 0x12d   :  { %v1020_v32 = vpop.f32.mrf.mxu1  ;;  %v908_v35 = vadd.f32 %v907_v31, %v3110_v33 }
 0x12e   :  { %v909_v36 = vpop.f32.mrf.mxu0 }
 0x12f   :  { %v1022_v37 = vpop.f32.mrf.mxu1  ;;  %v1021_v38 = vadd.f32 %v1020_v32, %v908_v35  ;;  %v910_v39 = vadd.f32 %v909_v36, %v3112_v34 }
 0x130   :  { %v911_v41 = vpop.f32.mrf.mxu0 }
 0x131   :  { %v1024_v47 = vpop.f32.mrf.mxu1  ;;  %v1023_v48 = vadd.f32 %v1022_v37, %v910_v39  ;;  %v902_v37 = vadd.f32 %v901_v26, %v3110_v33 }
 0x132   :  { %v3178_v49 = vpop.f32.mrf.mxu0 }
 0x133   :  { %v3180_v50 = vpop.f32.mrf.mxu1 }
 0x134   :  { %3363 = vst [vmem:[#allocation6_spill] sm:$0xff] %v3180_v50  ;;  %v917_v51 = vpop.f32.mrf.mxu0 }
 0x135   :  { %v1030_v53 = vpop.f32.mrf.mxu1  ;;  %v918_v59 = vadd.f32 %v917_v51, %v3110_v33 }
 0x136   :  { %v919_v60 = vpop.f32.mrf.mxu0 }
 0x137   :  { %v1032_v61 = vpop.f32.mrf.mxu1  ;;  %v1031_v62 = vadd.f32 %v1030_v53, %v918_v59  ;;  %v920_v63 = vadd.f32 %v919_v60, %v3112_v34 }
 0x138   :  { %v921_v1 = vpop.f32.mrf.mxu0 }
 0x139   :  { %v1034_v7 = vpop.f32.mrf.mxu1  ;;  %v1033_v8 = vadd.f32 %v1032_v61, %v920_v63  ;;  %v1015_v61 = vadd.f32 %v1014_v27, %v902_v37 }
 0x13a   :  { %v3184_v9 = vpop.f32.mrf.mxu0 }
 0x13b   :  { %3364 = vst [vmem:[#allocation7_spill] sm:$0xff] %v3184_v9  ;;  %v3186_v10 = vpop.f32.mrf.mxu1 }
 0x13c   :  { %3365 = vst [vmem:[#allocation8_spill] sm:$0xff] %v3186_v10  ;;  %v927_v11 = vpop.f32.mrf.mxu0 }
 0x13d   :  { %v1040_v13 = vpop.f32.mrf.mxu1  ;;  %v928_v19 = vadd.f32 %v927_v11, %v3110_v33 }
 0x13e   :  { %v929_v20 = vpop.f32.mrf.mxu0 }
 0x13f   :  { %v1042_v21 = vpop.f32.mrf.mxu1  ;;  %v1041_v22 = vadd.f32 %v1040_v13, %v928_v19  ;;  %v930_v23 = vadd.f32 %v929_v20, %v3112_v34 }
 0x140   :  { %v931_v25 = vpop.f32.mrf.mxu0 }
 0x141   :  { %v1044_v31 = vpop.f32.mrf.mxu1  ;;  %v1043_v32 = vadd.f32 %v1042_v21, %v930_v23  ;;  %v912_v21 = vadd.f32 %v911_v41, %v3110_v33 }
 0x142   :  { %v3190_v35 = vpop.f32.mrf.mxu0 }
 0x143   :  { %3366 = vst [vmem:[#allocation9_spill] sm:$0xff] %v3190_v35  ;;  %v3192_v36 = vpop.f32.mrf.mxu1 }
 0x144   :  { %3367 = vst [vmem:[#allocation10_spill] sm:$0xff] %v3192_v36  ;;  %v1083_v39 = vpop.f32.mrf.mxu0 }
 0x145   :  { %v1123_v51 = vpop.f32.mrf.mxu1 }
 0x146   :  { %v3195_v53 = vadd.f32 %v1123_v51, %v1011_v24  ;;  %v1085_v59 = vpop.f32.mrf.mxu0  ;;  %v1025_v24 = vadd.f32 %v1024_v47, %v912_v21 }
 0x147   :  { %v1125_v60 = vpop.f32.mrf.mxu1 }
 0x148   :  { %v3197_v63 = vadd.f32 %v1125_v60, %v1013_v28  ;;  %v1087_v19 = vpop.f32.mrf.mxu0  ;;  %v922_v60 = vadd.f32 %v921_v1, %v3110_v33 }
 0x149   :  { %v1127_v11 = vpop.f32.mrf.mxu1 }
 0x14a   :  { %v3199_v13 = vadd.f32 %v1127_v11, %v1015_v61  ;;  %v1089_v26 = vpop.f32.mrf.mxu0 }
 0x14b   :  { %v3201_v20 = vpop.f32.mrf.mxu1 }
 0x14c   :  { %v1093_v28 = vpop.f32.mrf.mxu0 }
 0x14d   :  { %v1133_v23 = vpop.f32.mrf.mxu1 }
 0x14e   :  { %v3204_v36 = vadd.f32 %v1133_v23, %v1021_v38  ;;  %v1095_v41 = vpop.f32.mrf.mxu0  ;;  %v1035_v38 = vadd.f32 %v1034_v7, %v922_v60  ;;  %v862_v7 = vadd.f32 %v3118_v42, %v3110_v33 }
 0x14f   :  { %v1135_v35 = vpop.f32.mrf.mxu1 }
 0x150   :  { %v3206_v51 = vadd.f32 %v1135_v35, %v1023_v48  ;;  %v1097_v48 = vpop.f32.mrf.mxu0 }
 0x151   :  { %v1137_v10 = vpop.f32.mrf.mxu1 }
 0x152   :  { %v3208_v27 = vadd.f32 %v1137_v10, %v1025_v24  ;;  %v932_v10 = vadd.f32 %v931_v25, %v3110_v33  ;;  %v1099_v1 = vpop.f32.mrf.mxu0  ;;  %v864_v25 = vadd.f32 %v3124_v45, %v3112_v34 }
 0x153   :  { %v3210_v37 = vpop.f32.mrf.mxu1 }
 0x154   :  { %3368 = vst [vmem:[#allocation11_spill] sm:$0xff] %v3208_v27  ;;  %v977_v42 = vadd.f32 %v3126_v46, %v864_v25 }
 0x155   :  { %v1143_v61 = vpop.f32.mrf.mxu1 }
 0x156   :  { %v3213_v11 = vadd.f32 %v1143_v61, %v1031_v62  ;;  %v1045_v62 = vadd.f32 %v1044_v31, %v932_v10  ;;  %v1086_v31 = vadd.f32 %v1085_v59, %v3122_v44  ;;  %v1090_v45 = vadd.f32 %v1089_v26, %v977_v42 }
 0x157   :  { %v1145_v9 = vpop.f32.mrf.mxu1  ;;  %v1094_v44 = vadd.f32 %v1093_v28, %v3129_v52 }
 0x158   :  { %3369 = vst [vmem:[#allocation12_spill] sm:$0xff] %v3213_v11  ;;  %v3215_v23 = vadd.f32 %v1145_v9, %v1033_v8 }
 0x159   :  { %v1147_v50 = vpop.f32.mrf.mxu1 }
 0x15a   :  { %v3217_v47 = vadd.f32 %v1147_v50, %v1035_v38  ;;  %v1103_v50 = vpop.f32.mrf.mxu0  ;;  %v975_v38 = vadd.f32 %v3120_v43, %v862_v7  ;;  %v874_v43 = vadd.f32 %v3138_v57, %v3112_v34 }
 0x15b   :  { %v3219_v35 = vpop.f32.mrf.mxu1 }
 0x15c   :  { %v987_v57 = vadd.f32 %v3140_v58, %v874_v43  ;;  %v1104_v58 = vadd.f32 %v1103_v50, %v3143_v0 }
 0x15d   :  { %v1153_v21 = vpop.f32.mrf.mxu1 }
 0x15e   :  { %v3222_v24 = vadd.f32 %v1153_v21, %v1041_v22  ;;  %v1084_v22 = vadd.f32 %v1083_v39, %v3115_v40 }
 0x15f   :  { %v1155_v27 = vpop.f32.mrf.mxu1 }
 0x160   :  { %v3224_v61 = vadd.f32 %v1155_v27, %v1043_v32  ;;  %v1105_v27 = vpop.f32.mrf.mxu0 }
 0x161   :  { %v1157_v11 = vpop.f32.mrf.mxu1 }
 0x162   :  { %v3228_v8 = vadd.f32 %v1157_v11, %v1045_v62  ;;  %v1088_v11 = vadd.f32 %v1087_v19, %v975_v38  ;;  %v872_v62 = vadd.f32 %v3132_v54, %v3110_v33  ;;  %v1107_v39 = vpop.f32.mrf.mxu0  ;;  %v1096_v54 = vadd.f32 %v1095_v41, %v3136_v56 }
 0x163   :  { %v3230_v9 = vpop.f32.mrf.mxu1 }
 0x164   :  { %3370 = vst [vmem:[#allocation13_spill] sm:$0xff] %v3228_v8  ;;  %3371 = vst [vmem:[#allocation14_spill] sm:$0xff] %v3230_v9  ;;  %v985_v25 = vadd.f32 %v3134_v55, %v872_v62  ;;  %v1109_v52 = vpop.f32.mrf.mxu0  ;;  %v882_v55 = vadd.f32 %v3146_v2, %v3110_v33 }
 0x165   :  { %v1196_v60 = vpop.f32.mrf.mxu1 }
 0x166   :  { %v1197_v32 = vadd.f32 %v1196_v60, %v1084_v22  ;;  %v1113_v43 = vpop.f32.mrf.mxu0  ;;  %v995_v2 = vadd.f32 %v3148_v3, %v882_v55  ;;  %v892_v3 = vadd.f32 %v3160_v14, %v3110_v33 }
 0x167   :  { %v1198_v10 = vpop.f32.mrf.mxu1 }
 0x168   :  { %v1199_v21 = vadd.f32 %v1198_v10, %v1086_v31  ;;  %v1307_v8 = vmul.f32 0.2, %v1197_v32  ;;  %vm1275_vm1 = vcmp.gt.f32.partialorder %v1197_v32, 0.0  ;;  %v1098_v10 = vadd.f32 %v1097_v48, %v985_v25  ;;  %v1115_v25 = vpop.f32.mrf.mxu0 }
 0x169   :  { %v1200_v9 = vpop.f32.mrf.mxu1  ;;  %v1005_v33 = vadd.f32 %v3162_v15, %v892_v3  ;;  %v1116_v14 = vadd.f32 %v1115_v25, %v3164_v16 }
 0x16a   :  { %v1201_v40 = vadd.f32 %v1200_v9, %v1088_v11  ;;  %v1308_v7 = vmul.f32 0.2, %v1199_v21  ;;  %v1339_v22 = vsel %vm1275_vm1, %v1197_v32, %v1307_v8  ;;  %vm1276_vm3 = vcmp.gt.f32.partialorder %v1199_v21, 0.0 }
 0x16b   :  { %v1202_v59 = vpop.f32.mrf.mxu1  ;;  %v1100_v32 = vadd.f32 %v1099_v1, %v987_v57 }
 0x16c   :  { %vm1277_vm2 = vcmp.gt.f32.partialorder %v1201_v40, 0.0  ;;  %v1309_v46 = vmul.f32 0.2, %v1201_v40  ;;  %v1203_v19 = vadd.f32 %v1202_v59, %v1090_v45  ;;  %v1340_v11 = vsel %vm1276_vm3, %v1199_v21, %v1308_v7 }
 0x16d   :  { %v1206_v26 = vpop.f32.mrf.mxu1  ;;  %v1106_v7 = vadd.f32 %v1105_v27, %v3150_v4 }
 0x16e   :  { %v1341_v60 = vsel %vm1277_vm2, %v1201_v40, %v1309_v46  ;;  %vm1278_vm4 = vcmp.gt.f32.partialorder %v1203_v19, 0.0  ;;  %v1310_v9 = vmul.f32 0.2, %v1203_v19  ;;  %v1207_v38 = vadd.f32 %v1206_v26, %v1094_v44 }
 0x16f   :  { %v1371_v28 = vpack.c.bf16 %v1341_v60, %v1339_v22  ;;  %v1208_v31 = vpop.f32.mrf.mxu1  ;;  %v884_v40 = vadd.f32 %v3152_v5, %v3112_v34  ;;  %v1108_v26 = vadd.f32 %v1107_v39, %v995_v2 }
 0x170   :  { %v1209_v42 = vadd.f32 %v1208_v31, %v1096_v54  ;;  %v1342_v45 = vsel %vm1278_vm4, %v1203_v19, %v1310_v9  ;;  %v1311_v56 = vmul.f32 0.2, %v1207_v38  ;;  %vm1279_vm5 = vcmp.gt.f32.partialorder %v1207_v38, 0.0 }
 0x171   :  { %v1210_v41 = vpop.f32.mrf.mxu1  ;;  %v1372_v8 = vpack.c.bf16 %v1342_v45, %v1340_v11  ;;  %v997_v50 = vadd.f32 %v3154_v6, %v884_v40  ;;  %v1114_v6 = vadd.f32 %v1113_v43, %v3157_v12  ;;  %v1117_v11 = vpop.f32.mrf.mxu0 }
 0x172   :  { %v1211_v62 = vadd.f32 %v1210_v41, %v1098_v10  ;;  %v1312_v48 = vmul.f32 0.2, %v1209_v42  ;;  %vm1280_vm7 = vcmp.gt.f32.partialorder %v1209_v42, 0.0  ;;  %v1343_v46 = vsel %vm1279_vm5, %v1207_v38, %v1311_v56 }
 0x173   :  { %v1212_v44 = vpop.f32.mrf.mxu1  ;;  %1554 = vmatprep.mubr.bf16.mxu0 %v1372_v8  ;;  %v1110_v38 = vadd.f32 %v1109_v52, %v997_v50  ;;  %v894_v10 = vadd.f32 %v3166_v17, %v3112_v34 }
 0x174   :  { %vm1281_vm6 = vcmp.gt.f32.partialorder %v1211_v62, 0.0  ;;  %v1313_v21 = vmul.f32 0.2, %v1211_v62  ;;  %v1213_v59 = vadd.f32 %v1212_v44, %v1100_v32  ;;  %1555 = vmatmul.mubr.bf16.vlgmr.msra.gmra.mxu0 %v1371_v28  ;;  %v1344_v9 = vsel %vm1280_vm7, %v1209_v42, %v1312_v48  ;;  %v1119_v32 = vpop.f32.mrf.mxu0 }
 0x175   :  { %v1216_v1 = vpop.f32.mrf.mxu1  ;;  %v1007_v8 = vadd.f32 %v3168_v18, %v894_v10 }
 0x176   :  { %vm1282_vm8 = vcmp.gt.f32.partialorder %v1213_v59, 0.0  ;;  %v1314_v5 = vmul.f32 0.2, %v1213_v59  ;;  %v1217_v19 = vadd.f32 %v1216_v1, %v1104_v58  ;;  %v1345_v0 = vsel %vm1281_vm6, %v1211_v62, %v1313_v21 }
 0x177   :  { %v1218_v54 = vpop.f32.mrf.mxu1  ;;  %v1373_v22 = vpack.c.bf16 %v1345_v0, %v1343_v46  ;;  %v1118_v58 = vadd.f32 %v1117_v11, %v1005_v33 }
 0x178   :  { %v1219_v60 = vadd.f32 %v1218_v54, %v1106_v7  ;;  %v1346_v57 = vsel %vm1282_vm8, %v1213_v59, %v1314_v5  ;;  %v1315_v4 = vmul.f32 0.2, %v1217_v19  ;;  %vm1283_vm9 = vcmp.gt.f32.partialorder %v1217_v19, 0.0 }
 0x179   :  { %v1220_v27 = vpop.f32.mrf.mxu1  ;;  %v1374_v28 = vpack.c.bf16 %v1346_v57, %v1344_v9  ;;  %v1120_v59 = vadd.f32 %v1119_v32, %v1007_v8  ;;  %v904_v7 = vadd.f32 %v3172_v29, %v3112_v34  ;;  %v3373_v8 = vld [vmem:[#allocation11_spill] sm:$0xff] }
 0x17a   :  { %v1221_v31 = vadd.f32 %v1220_v27, %v1108_v26  ;;  %v1316_v39 = vmul.f32 0.2, %v1219_v60  ;;  %vm1284_vm11 = vcmp.gt.f32.partialorder %v1219_v60, 0.0  ;;  %v1347_v56 = vsel %vm1283_vm9, %v1217_v19, %v1315_v4 }
 0x17b   :  { %v1222_v45 = vpop.f32.mrf.mxu1  ;;  %1562 = vmatprep.mubr.bf16.mxu0 %v1374_v28 }
 0x17c   :  { %vm1285_vm10 = vcmp.gt.f32.partialorder %v1221_v31, 0.0  ;;  %v1317_v42 = vmul.f32 0.2, %v1221_v31  ;;  %v1223_v55 = vadd.f32 %v1222_v45, %v1110_v38  ;;  %1563 = vmatmul.mubr.bf16.gmra.mxu0 %v1373_v22  ;;  %v1348_v44 = vsel %vm1284_vm11, %v1219_v60, %v1316_v39 }
 0x17d   :  { %v1226_v52 = vpop.f32.mrf.mxu1  ;;  %v1017_v60 = vadd.f32 %v3174_v30, %v904_v7  ;;  %v3376_v7 = vld [vmem:[#allocation8_spill] sm:$0xff] }
 0x17e   :  { %vm1286_vm12 = vcmp.gt.f32.partialorder %v1223_v55, 0.0  ;;  %v1318_v17 = vmul.f32 0.2, %v1223_v55  ;;  %v1227_v41 = vadd.f32 %v1226_v52, %v1114_v6  ;;  %v1349_v12 = vsel %vm1285_vm10, %v1221_v31, %v1317_v42 }
 0x17f   :  { %v1228_v62 = vpop.f32.mrf.mxu1  ;;  %v1375_v40 = vpack.c.bf16 %v1349_v12, %v1347_v56  ;;  %v1130_v28 = vadd.f32 %v3201_v20, %v1017_v60 }
 0x180   :  { %v1229_v43 = vadd.f32 %v1228_v62, %v1116_v14  ;;  %v1350_v48 = vsel %vm1286_vm12, %v1223_v55, %v1318_v17  ;;  %v1319_v15 = vmul.f32 0.2, %v1227_v41  ;;  %vm1287_vm13 = vcmp.gt.f32.partialorder %v1227_v41, 0.0  ;;  %v3372_v55 = vld [vmem:[#allocation6_spill] sm:$0xff]  ;;  %v3374_v62 = vld [vmem:[#allocation7_spill] sm:$0xff] }
 0x181   :  { %v1230_v21 = vpop.f32.mrf.mxu1  ;;  %v1376_v16 = vpack.c.bf16 %v1350_v48, %v1348_v44 }
 0x182   :  { %v1231_v2 = vadd.f32 %v1230_v21, %v1118_v58  ;;  %v1320_v46 = vmul.f32 0.2, %v1229_v43  ;;  %vm1288_vm15 = vcmp.gt.f32.partialorder %v1229_v43, 0.0  ;;  %v1351_v0 = vsel %vm1287_vm13, %v1227_v41, %v1319_v15  ;;  %v3375_v21 = vld [vmem:[#allocation12_spill] sm:$0xff] }
 0x183   :  { %v1232_v1 = vpop.f32.mrf.mxu1  ;;  %1570 = vmatprep.mubr.bf16.mxu0 %v1376_v16 }
 0x184   :  { %vm1289_vm14 = vcmp.gt.f32.partialorder %v1231_v2, 0.0  ;;  %v1321_v18 = vmul.f32 0.2, %v1231_v2  ;;  %v1233_v5 = vadd.f32 %v1232_v1, %v1120_v59  ;;  %1571 = vmatmul.mubr.bf16.gmra.mxu0 %v1375_v40  ;;  %v1352_v9 = vsel %vm1288_vm15, %v1229_v43, %v1320_v46 }
 0x185   :  { %v1236_v19 = vpop.f32.mrf.mxu1 }
 0x186   :  { %vm1290_vm0 = vcmp.gt.f32.partialorder %v1233_v5, 0.0  ;;  %v1322_v50 = vmul.f32 0.2, %v1233_v5  ;;  %v1237_v25 = vadd.f32 %v1236_v19, %v3195_v53  ;;  %v1353_v54 = vsel %vm1289_vm14, %v1231_v2, %v1321_v18 }
 0x187   :  { %v1238_v22 = vpop.f32.mrf.mxu1  ;;  %v1377_v26 = vpack.c.bf16 %v1353_v54, %v1351_v0  ;;  %v914_v53 = vadd.f32 %v3178_v49, %v3112_v34 }
 0x188   :  { %v1239_v29 = vadd.f32 %v1238_v22, %v3197_v63  ;;  %v1354_v57 = vsel %vm1290_vm0, %v1233_v5, %v1322_v50  ;;  %v1323_v3 = vmul.f32 0.2, %v1237_v25  ;;  %vm1291_vm1 = vcmp.gt.f32.partialorder %v1237_v25, 0.0  ;;  %v3377_v22 = vld [vmem:[#allocation9_spill] sm:$0xff] }
 0x189   :  { %v1240_v4 = vpop.f32.mrf.mxu1  ;;  %v1378_v27 = vpack.c.bf16 %v1354_v57, %v1352_v9  ;;  %v1027_v33 = vadd.f32 %v3372_v55, %v914_v53 }
 0x18a   :  { %v1241_v38 = vadd.f32 %v1240_v4, %v3199_v13  ;;  %v1324_v10 = vmul.f32 0.2, %v1239_v29  ;;  %vm1292_vm3 = vcmp.gt.f32.partialorder %v1239_v29, 0.0  ;;  %v1355_v11 = vsel %vm1291_vm1, %v1237_v25, %v1323_v3 }
 0x18b   :  { %v1242_v31 = vpop.f32.mrf.mxu1  ;;  %1578 = vmatprep.mubr.bf16.mxu0 %v1378_v27  ;;  %v1140_v12 = vadd.f32 %v3210_v37, %v1027_v33 }
 0x18c   :  { %vm1293_vm2 = vcmp.gt.f32.partialorder %v1241_v38, 0.0  ;;  %v1325_v30 = vmul.f32 0.2, %v1241_v38  ;;  %v1243_v6 = vadd.f32 %v1242_v31, %v1130_v28  ;;  %1579 = vmatmul.mubr.bf16.gmra.mxu0 %v1377_v26  ;;  %v1356_v14 = vsel %vm1292_vm3, %v1239_v29, %v1324_v10 }
 0x18d   :  { %v1246_v63 = vpop.f32.mrf.mxu1  ;;  %v934_v26 = vadd.f32 %v3377_v22, %v3112_v34 }
 0x18e   :  { %vm1294_vm4 = vcmp.gt.f32.partialorder %v1243_v6, 0.0  ;;  %v1326_v45 = vmul.f32 0.2, %v1243_v6  ;;  %v1247_v20 = vadd.f32 %v1246_v63, %v3204_v36  ;;  %v1357_v39 = vsel %vm1293_vm2, %v1241_v38, %v1325_v30  ;;  %v3378_v38 = vld [vmem:[#allocation10_spill] sm:$0xff] }
 0x18f   :  { %v1248_v42 = vpop.f32.mrf.mxu1  ;;  %v1379_v13 = vpack.c.bf16 %v1357_v39, %v1355_v11  ;;  %v924_v36 = vadd.f32 %v3374_v62, %v3112_v34  ;;  %v1047_v53 = vadd.f32 %v3378_v38, %v934_v26  ;;  %v3379_v63 = vld [vmem:[#allocation14_spill] sm:$0xff] }
 0x190   :  { %v1249_v49 = vadd.f32 %v1248_v42, %v3206_v51  ;;  %v1358_v52 = vsel %vm1294_vm4, %v1243_v6, %v1326_v45  ;;  %v1327_v56 = vmul.f32 0.2, %v1247_v20  ;;  %vm1295_vm5 = vcmp.gt.f32.partialorder %v1247_v20, 0.0 }
 0x191   :  { %v1250_v17 = vpop.f32.mrf.mxu1  ;;  %v1380_v41 = vpack.c.bf16 %v1358_v52, %v1356_v14  ;;  %v1037_v1 = vadd.f32 %v3376_v7, %v924_v36  ;;  %v1160_v11 = vadd.f32 %v3379_v63, %v1047_v53 }
 0x192   :  { %v1251_v32 = vadd.f32 %v1250_v17, %v3373_v8  ;;  %v1328_v58 = vmul.f32 0.2, %v1249_v49  ;;  %vm1296_vm7 = vcmp.gt.f32.partialorder %v1249_v49, 0.0  ;;  %v1359_v48 = vsel %vm1295_vm5, %v1247_v20, %v1327_v56  ;;  %v3380_v20 = vld [vmem:[#allocation13_spill] sm:$0xff] }
 0x193   :  { %v1252_v40 = vpop.f32.mrf.mxu1  ;;  %1586 = vmatprep.mubr.bf16.mxu0 %v1380_v41  ;;  %v1150_v25 = vadd.f32 %v3219_v35, %v1037_v1 }
 0x194   :  { %vm1297_vm6 = vcmp.gt.f32.partialorder %v1251_v32, 0.0  ;;  %v1329_v43 = vmul.f32 0.2, %v1251_v32  ;;  %v1253_v44 = vadd.f32 %v1252_v40, %v1140_v12  ;;  %1587 = vmatmul.mubr.bf16.gmra.mxu0 %v1379_v13  ;;  %v1360_v18 = vsel %vm1296_vm7, %v1249_v49, %v1328_v58  ;;  %v3295_v12 = vld [vmem:[%s3359_s4] ss:$0 sm:$0xff]  ;;  %s2377_s4 = smov [#allocation3]  }
 0x195   :  { %v1256_v51 = vpop.f32.mrf.mxu1 }
 0x196   :  { %vm1298_vm8 = vcmp.gt.f32.partialorder %v1253_v44, 0.0  ;;  %v1330_v15 = vmul.f32 0.2, %v1253_v44  ;;  %v1257_v37 = vadd.f32 %v1256_v51, %v3375_v21  ;;  %v1361_v16 = vsel %vm1297_vm6, %v1251_v32, %v1329_v43 }
 0x197   :  { %v1258_v59 = vpop.f32.mrf.mxu1  ;;  %v1381_v2 = vpack.c.bf16 %v1361_v16, %v1359_v48 }
 0x198   :  { %v1259_v46 = vadd.f32 %v1258_v59, %v3215_v23  ;;  %v1362_v5 = vsel %vm1298_vm8, %v1253_v44, %v1330_v15  ;;  %v1331_v19 = vmul.f32 0.2, %v1257_v37  ;;  %vm1299_vm9 = vcmp.gt.f32.partialorder %v1257_v37, 0.0  ;;  %v3301_v44 = vld [vmem:[%s3360_s5] ss:$0 sm:$0xff]  ;;  %s1880_s5 = sshll.u32 %s2377_s4, 4  ;;  %s1881_s5 = int_to_ptr.vmem [resolvable:$true] %s1880_s5 }
 0x199   :  { %v1260_v0 = vpop.f32.mrf.mxu1  ;;  %v1382_v50 = vpack.c.bf16 %v1362_v5, %v1360_v18  ;;  %s2354_s20 = scalar_lea.vmem %s1881_s5, 16  ;;  %s2358_s21 = scalar_lea.vmem %s1881_s5, 32 }
 0x19a   :  { %v1261_v54 = vadd.f32 %v1260_v0, %v3217_v47  ;;  %v1332_v29 = vmul.f32 0.2, %v1259_v46  ;;  %vm1300_vm11 = vcmp.gt.f32.partialorder %v1259_v46, 0.0  ;;  %v1363_v3 = vsel %vm1299_vm9, %v1257_v37, %v1331_v19  ;;  %p2355_p0 = scmp.ne.s32.totalorder %s1881_s5, %s2354_s20  ;;  %p2359_p1 = scmp.lt.s32.totalorder %s1881_s5, %s1881_s5 }
 0x19b   :  { %v1262_v60 = vpop.f32.mrf.mxu1  ;;  %1594 = vmatprep.mubr.bf16.mxu0 %v1382_v50  ;;  %p2360_p2 = scmp.lt.s32.totalorder %s2358_s21, %s2354_s20 }
 0x19c   :  { %vm1301_vm10 = vcmp.gt.f32.partialorder %v1261_v54, 0.0  ;;  %v1333_v9 = vmul.f32 0.2, %v1261_v54  ;;  %v1263_v57 = vadd.f32 %v1262_v60, %v1150_v25  ;;  %1595 = vmatmul.mubr.bf16.gmra.mxu0 %v1381_v2  ;;  %v1364_v31 = vsel %vm1300_vm11, %v1259_v46, %v1332_v29 }
 0x19d   :  { %v1266_v23 = vpop.f32.mrf.mxu1  ;;  %p2361_p3 = por %p2360_p2, %p2359_p1 }
 0x19e   :  { %vm1302_vm12 = vcmp.gt.f32.partialorder %v1263_v57, 0.0  ;;  %v1334_v4 = vmul.f32 0.2, %v1263_v57  ;;  %v1267_v35 = vadd.f32 %v1266_v23, %v3222_v24  ;;  %v1365_v27 = vsel %vm1301_vm10, %v1261_v54, %v1333_v9 }
 0x19f   :  { %v1268_v28 = vpop.f32.mrf.mxu1  ;;  %v1383_v47 = vpack.c.bf16 %v1365_v27, %v1363_v3  ;;  %p2362_p4 = pnand %p2361_p3, %p2355_p0 }
 0x1a0   :  { %v1269_v34 = vadd.f32 %v1268_v28, %v3224_v61  ;;  %v1366_v10 = vsel %vm1302_vm12, %v1263_v57, %v1334_v4  ;;  %v1335_v45 = vmul.f32 0.2, %v1267_v35  ;;  %vm1303_vm13 = vcmp.gt.f32.partialorder %v1267_v35, 0.0 }
 0x1a1   :  { %v1270_v30 = vpop.f32.mrf.mxu1  ;;  %v1384_v6 = vpack.c.bf16 %v1366_v10, %v1364_v31 }
 0x1a2   :  { %v1271_v39 = vadd.f32 %v1270_v30, %v3380_v20  ;;  %v1336_v24 = vmul.f32 0.2, %v1269_v34  ;;  %vm1304_vm15 = vcmp.gt.f32.partialorder %v1269_v34, 0.0  ;;  %v1367_v33 = vsel %vm1303_vm13, %v1267_v35, %v1335_v45 }
 0x1a3   :  { %v1272_v42 = vpop.f32.mrf.mxu1  ;;  %1602 = vmatprep.mubr.bf16.mxu0 %v1384_v6 }
 0x1a4   :  { %vm1305_vm14 = vcmp.gt.f32.partialorder %v1271_v39, 0.0  ;;  %v1337_v13 = vmul.f32 0.2, %v1271_v39  ;;  %v1273_v55 = vadd.f32 %v1272_v42, %v1160_v11  ;;  %1603 = vmatmul.mubr.bf16.gmra.mxu0 %v1383_v47  ;;  %v1368_v52 = vsel %vm1304_vm15, %v1269_v34, %v1336_v24 }
 0x1a6   :  { %vm1306_vm0 = vcmp.gt.f32.partialorder %v1273_v55, 0.0  ;;  %v1338_v61 = vmul.f32 0.2, %v1273_v55  ;;  %v1369_v49 = vsel %vm1305_vm14, %v1271_v39, %v1337_v13 }
 0x1a7   :  { %v1385_v14 = vpack.c.bf16 %v1369_v49, %v1367_v33 }
 0x1a8   :  { %v1370_v56 = vsel %vm1306_vm0, %v1273_v55, %v1338_v61 }
 0x1a9   :  { %v1386_v17 = vpack.c.bf16 %v1370_v56, %v1368_v52 }
 0x1ab   :  { %1610 = vmatprep.mubr.bf16.mxu0 %v1386_v17 }
 0x1ac   :  { %1611 = vmatmul.mubr.bf16.gmra.mxu0 %v1385_v14 }
 0x234   :  { %v2045_v41 = vpop.f32.mrf.mxu0 }
 0x236   :  { %v2046_v8 = vpop.f32.mrf.mxu0 }
 0x237   :  { %v2047_v32 = vadd.f32 %v2046_v8, %v2045_v41 }
 0x238   :  { %v2048_v62 = vpop.f32.mrf.mxu0 }
 0x239   :  { %v1557_v36 = vadd.f32 %v2047_v32, %v3295_v12 }
 0x23a   :  { %v2049_v40 = vpop.f32.mrf.mxu0 }
 0x23b   :  { %v2050_v58 = vadd.f32 %v2049_v40, %v2048_v62  ;;  %vm1619_vm1 = vcmp.gt.f32.partialorder %v1557_v36, 0.0  ;;  %v1635_v43 = vmul.f32 0.2, %v1557_v36 }
 0x23c   :  { %v2051_v51 = vpop.f32.mrf.mxu0 }
 0x23d   :  { %v1560_v48 = vadd.f32 %v2050_v58, %v3295_v12  ;;  %v1651_v15 = vsel %vm1619_vm1, %v1557_v36, %v1635_v43 }
 0x23e   :  { %v2052_v21 = vpop.f32.mrf.mxu0  ;;  %v1674_v37 = vmul.f32 %v3301_v44, %v1651_v15 }
 0x23f   :  { %v2053_v16 = vadd.f32 %v2052_v21, %v2051_v51  ;;  %vm1620_vm2 = vcmp.gt.f32.partialorder %v1560_v48, 0.0  ;;  %v1636_v59 = vmul.f32 0.2, %v1560_v48 }
 0x240   :  { %v2054_v2 = vpop.f32.mrf.mxu0  ;;  %1690 = vadd.xlane.f32.xlu0 %v1674_v37 }
 0x241   :  { %v1565_v7 = vadd.f32 %v2053_v16, %v3295_v12  ;;  %v1652_v1 = vsel %vm1620_vm2, %v1560_v48, %v1636_v59 }
 0x242   :  { %v2055_v46 = vpop.f32.mrf.mxu0  ;;  %v1675_v18 = vmul.f32 %v3301_v44, %v1652_v1 }
 0x243   :  { %v2056_v5 = vadd.f32 %v2055_v46, %v2054_v2  ;;  %vm1621_vm3 = vcmp.gt.f32.partialorder %v1565_v7, 0.0  ;;  %v1637_v19 = vmul.f32 0.2, %v1565_v7 }
 0x244   :  { %v2057_v0 = vpop.f32.mrf.mxu0  ;;  %1692 = vadd.xlane.f32.xlu0 %v1675_v18 }
 0x245   :  { %v1568_v50 = vadd.f32 %v2056_v5, %v3295_v12  ;;  %v1653_v25 = vsel %vm1621_vm3, %v1565_v7, %v1637_v19 }
 0x246   :  { %v2058_v54 = vpop.f32.mrf.mxu0  ;;  %v1676_v22 = vmul.f32 %v3301_v44, %v1653_v25 }
 0x247   :  { %v2059_v26 = vadd.f32 %v2058_v54, %v2057_v0  ;;  %vm1622_vm4 = vcmp.gt.f32.partialorder %v1568_v50, 0.0  ;;  %v1638_v60 = vmul.f32 0.2, %v1568_v50 }
 0x248   :  { %v2060_v29 = vpop.f32.mrf.mxu0  ;;  %1694 = vadd.xlane.f32.xlu1 %v1676_v22 }
 0x249   :  { %v1573_v9 = vadd.f32 %v2059_v26, %v3295_v12  ;;  %v1654_v57 = vsel %vm1622_vm4, %v1568_v50, %v1638_v60 }
 0x24a   :  { %v2061_v23 = vpop.f32.mrf.mxu0  ;;  %v1677_v3 = vmul.f32 %v3301_v44, %v1654_v57 }
 0x24b   :  { %v2062_v4 = vadd.f32 %v2061_v23, %v2060_v29  ;;  %vm1623_vm5 = vcmp.gt.f32.partialorder %v1573_v9, 0.0  ;;  %v1639_v35 = vmul.f32 0.2, %v1573_v9 }
 0x24c   :  { %v2063_v27 = vpop.f32.mrf.mxu0  ;;  %1696 = vadd.xlane.f32.xlu1 %v1677_v3 }
 0x24d   :  { %v1576_v28 = vadd.f32 %v2062_v4, %v3295_v12  ;;  %v1655_v47 = vsel %vm1623_vm5, %v1573_v9, %v1639_v35 }
 0x24e   :  { %v2064_v38 = vpop.f32.mrf.mxu0  ;;  %v1678_v53 = vmul.f32 %v3301_v44, %v1655_v47 }
 0x24f   :  { %v2065_v34 = vadd.f32 %v2064_v38, %v2063_v27  ;;  %vm1624_vm6 = vcmp.gt.f32.partialorder %v1576_v28, 0.0  ;;  %v1640_v31 = vmul.f32 0.2, %v1576_v28 }
 0x250   :  { %v2066_v10 = vpop.f32.mrf.mxu0  ;;  %1698 = vadd.xlane.f32.xlu0 %v1678_v53 }
 0x251   :  { %v1581_v30 = vadd.f32 %v2065_v34, %v3295_v12  ;;  %v1656_v6 = vsel %vm1624_vm6, %v1576_v28, %v1640_v31 }
 0x252   :  { %v2067_v63 = vpop.f32.mrf.mxu0  ;;  %v1679_v11 = vmul.f32 %v3301_v44, %v1656_v6 }
 0x253   :  { %v2068_v45 = vadd.f32 %v2067_v63, %v2066_v10  ;;  %vm1625_vm7 = vcmp.gt.f32.partialorder %v1581_v30, 0.0  ;;  %v1641_v20 = vmul.f32 0.2, %v1581_v30 }
 0x254   :  { %v2069_v39 = vpop.f32.mrf.mxu0  ;;  %1700 = vadd.xlane.f32.xlu1 %v1679_v11 }
 0x255   :  { %v1584_v42 = vadd.f32 %v2068_v45, %v3295_v12  ;;  %v1657_v24 = vsel %vm1625_vm7, %v1581_v30, %v1641_v20 }
 0x256   :  { %v2070_v13 = vpop.f32.mrf.mxu0  ;;  %v1680_v55 = vmul.f32 %v3301_v44, %v1657_v24 }
 0x257   :  { %v2071_v61 = vadd.f32 %v2070_v13, %v2069_v39  ;;  %vm1626_vm8 = vcmp.gt.f32.partialorder %v1584_v42, 0.0  ;;  %v1642_v33 = vmul.f32 0.2, %v1584_v42  ;;  %v3334_v39 = vld [vmem:[#allocation2] ss:$0 sm:$0xff] }
 0x258   :  { %v2072_v49 = vpop.f32.mrf.mxu0  ;;  %1702 = vadd.xlane.f32.xlu0 %v1680_v55 }
 0x259   :  { %v1589_v14 = vadd.f32 %v2071_v61, %v3295_v12  ;;  %v1658_v52 = vsel %vm1626_vm8, %v1584_v42, %v1642_v33 }
 0x25a   :  { %v2073_v56 = vpop.f32.mrf.mxu0  ;;  %v1681_v17 = vmul.f32 %v3301_v44, %v1658_v52 }
 0x25b   :  { %v2074_v41 = vadd.f32 %v2073_v56, %v2072_v49  ;;  %vm1627_vm9 = vcmp.gt.f32.partialorder %v1589_v14, 0.0  ;;  %v1643_v8 = vmul.f32 0.2, %v1589_v14 }
 0x25c   :  { %v2075_v32 = vpop.f32.mrf.mxu0  ;;  %1704 = vadd.xlane.f32.xlu1 %v1681_v17 }
 0x25d   :  { %v1592_v62 = vadd.f32 %v2074_v41, %v3295_v12  ;;  %v1659_v36 = vsel %vm1627_vm9, %v1589_v14, %v1643_v8 }
 0x25e   :  { %v2076_v40 = vpop.f32.mrf.mxu0  ;;  %v1682_v58 = vmul.f32 %v3301_v44, %v1659_v36 }
 0x25f   :  { %v2077_v43 = vadd.f32 %v2076_v40, %v2075_v32  ;;  %vm1628_vm10 = vcmp.gt.f32.partialorder %v1592_v62, 0.0  ;;  %v1644_v51 = vmul.f32 0.2, %v1592_v62 }
 0x260   :  { %v2078_v48 = vpop.f32.mrf.mxu0  ;;  %1706 = vadd.xlane.f32.xlu0 %v1682_v58 }
 0x261   :  { %v1597_v15 = vadd.f32 %v2077_v43, %v3295_v12  ;;  %v1660_v21 = vsel %vm1628_vm10, %v1592_v62, %v1644_v51 }
 0x262   :  { %v2079_v37 = vpop.f32.mrf.mxu0  ;;  %v1683_v16 = vmul.f32 %v3301_v44, %v1660_v21 }
 0x263   :  { %v2080_v59 = vadd.f32 %v2079_v37, %v2078_v48  ;;  %vm1629_vm11 = vcmp.gt.f32.partialorder %v1597_v15, 0.0  ;;  %v1645_v2 = vmul.f32 0.2, %v1597_v15 }
 0x264   :  { %v2081_v7 = vpop.f32.mrf.mxu0  ;;  %1708 = vadd.xlane.f32.xlu1 %v1683_v16 }
 0x265   :  { %v1600_v1 = vadd.f32 %v2080_v59, %v3295_v12  ;;  %v1661_v46 = vsel %vm1629_vm11, %v1597_v15, %v1645_v2 }
 0x266   :  { %v2082_v18 = vpop.f32.mrf.mxu0  ;;  %v1684_v5 = vmul.f32 %v3301_v44, %v1661_v46 }
 0x267   :  { %v2083_v19 = vadd.f32 %v2082_v18, %v2081_v7  ;;  %vm1630_vm12 = vcmp.gt.f32.partialorder %v1600_v1, 0.0  ;;  %v1646_v0 = vmul.f32 0.2, %v1600_v1 }
 0x268   :  { %v2084_v50 = vpop.f32.mrf.mxu0  ;;  %1710 = vadd.xlane.f32.xlu0 %v1684_v5 }
 0x269   :  { %v1605_v25 = vadd.f32 %v2083_v19, %v3295_v12  ;;  %v1662_v54 = vsel %vm1630_vm12, %v1600_v1, %v1646_v0 }
 0x26a   :  { %v2085_v22 = vpop.f32.mrf.mxu0  ;;  %v1685_v26 = vmul.f32 %v3301_v44, %v1662_v54 }
 0x26b   :  { %v2086_v60 = vadd.f32 %v2085_v22, %v2084_v50  ;;  %vm1631_vm13 = vcmp.gt.f32.partialorder %v1605_v25, 0.0  ;;  %v1647_v29 = vmul.f32 0.2, %v1605_v25 }
 0x26c   :  { %v2087_v9 = vpop.f32.mrf.mxu0  ;;  %1712 = vadd.xlane.f32.xlu1 %v1685_v26 }
 0x26d   :  { %v1608_v57 = vadd.f32 %v2086_v60, %v3295_v12  ;;  %v1663_v23 = vsel %vm1631_vm13, %v1605_v25, %v1647_v29 }
 0x26e   :  { %v2088_v3 = vpop.f32.mrf.mxu0  ;;  %v1686_v4 = vmul.f32 %v3301_v44, %v1663_v23 }
 0x26f   :  { %v2089_v35 = vadd.f32 %v2088_v3, %v2087_v9  ;;  %vm1632_vm14 = vcmp.gt.f32.partialorder %v1608_v57, 0.0  ;;  %v1648_v27 = vmul.f32 0.2, %v1608_v57 }
 0x270   :  { %v2090_v28 = vpop.f32.mrf.mxu0  ;;  %1714 = vadd.xlane.f32.xlu0 %v1686_v4 }
 0x271   :  { %v1613_v47 = vadd.f32 %v2089_v35, %v3295_v12  ;;  %v1664_v38 = vsel %vm1632_vm14, %v1608_v57, %v1648_v27 }
 0x272   :  { %v2091_v53 = vpop.f32.mrf.mxu0  ;;  %v1687_v34 = vmul.f32 %v3301_v44, %v1664_v38 }
 0x273   :  { %v2092_v31 = vadd.f32 %v2091_v53, %v2090_v28  ;;  %vm1633_vm15 = vcmp.gt.f32.partialorder %v1613_v47, 0.0  ;;  %v1649_v10 = vmul.f32 0.2, %v1613_v47 }
 0x274   :  { %1716 = vadd.xlane.f32.xlu1 %v1687_v34 }
 0x275   :  { %v1616_v30 = vadd.f32 %v2092_v31, %v3295_v12  ;;  %v1665_v6 = vsel %vm1633_vm15, %v1613_v47, %v1649_v10 }
 0x276   :  { %v1688_v63 = vmul.f32 %v3301_v44, %v1665_v6 }
 0x277   :  { %vm1634_vm0 = vcmp.gt.f32.partialorder %v1616_v30, 0.0  ;;  %v1650_v11 = vmul.f32 0.2, %v1616_v30 }
 0x278   :  { %1718 = vadd.xlane.f32.xlu0 %v1688_v63 }
 0x279   :  { %v1666_v45 = vsel %vm1634_vm0, %v1616_v30, %v1650_v11 }
 0x27a   :  { %v1689_v20 = vmul.f32 %v3301_v44, %v1666_v45 }
 0x27c   :  { %1720 = vadd.xlane.f32.xlu1 %v1689_v20 }
 0x2c9   :  { %v1691_v42 = vpop.xlane.xlu0 %1690 }
 0x2ca   :  { %v1729_v24 = vadd.f32 %v3334_v39, %v1691_v42 }
 0x2cc   :  { %v2013_v13 = vmul.f32 -1.442695, %v1729_v24 }
 0x2cd   :  { %v1693_v55 = vpop.xlane.xlu0 %1692 }
 0x2ce   :  { %2290 = vpow2.f32 %v2013_v13  ;;  %v1730_v12 = vadd.f32 %v3334_v39, %v1693_v55 }
 0x2d0   :  { %v2014_v61 = vmul.f32 -1.442695, %v1730_v12 }
 0x2d1   :  { %v1695_v33 = vpop.xlane.xlu1 %1694 }
 0x2d2   :  { %2292 = vpow2.f32 %v2014_v61  ;;  %v1731_v49 = vadd.f32 %v3334_v39, %v1695_v33 }
 0x2d4   :  { %v2015_v14 = vmul.f32 -1.442695, %v1731_v49 }
 0x2d5   :  { %v1697_v52 = vpop.xlane.xlu1 %1696 }
 0x2d6   :  { %2294 = vpow2.f32 %v2015_v14  ;;  %v1732_v44 = vadd.f32 %v3334_v39, %v1697_v52 }
 0x2d8   :  { %v2016_v56 = vmul.f32 -1.442695, %v1732_v44 }
 0x2d9   :  { %v1699_v17 = vpop.xlane.xlu0 %1698 }
 0x2da   :  { %2296 = vpow2.f32 %v2016_v56  ;;  %v1733_v41 = vadd.f32 %v3334_v39, %v1699_v17 }
 0x2db   :  { %v2291_v8 = vpop.eup %2290 }
 0x2dc   :  { %v1793_v32 = vadd.f32 1.0, %v2291_v8  ;;  %v2017_v62 = vmul.f32 -1.442695, %v1733_v41 }
 0x2dd   :  { %v1701_v36 = vpop.xlane.xlu1 %1700 }
 0x2de   :  { %2298 = vrcp.f32 %v1793_v32  ;;  %v1734_v40 = vadd.f32 %v3334_v39, %v1701_v36 }
 0x2df   :  { %v2293_v58 = vpop.eup %2292  ;;  %2300 = vpow2.f32 %v2017_v62 }
 0x2e0   :  { %v1794_v43 = vadd.f32 1.0, %v2293_v58  ;;  %v2018_v51 = vmul.f32 -1.442695, %v1734_v40 }
 0x2e1   :  { %v1703_v48 = vpop.xlane.xlu0 %1702 }
 0x2e2   :  { %2302 = vrcp.f32 %v1794_v43  ;;  %v1735_v15 = vadd.f32 %v3334_v39, %v1703_v48 }
 0x2e3   :  { %v2295_v21 = vpop.eup %2294  ;;  %2304 = vpow2.f32 %v2018_v51 }
 0x2e4   :  { %v1795_v37 = vadd.f32 1.0, %v2295_v21  ;;  %v2019_v16 = vmul.f32 -1.442695, %v1735_v15 }
 0x2e5   :  { %v1705_v59 = vpop.xlane.xlu1 %1704 }
 0x2e6   :  { %2306 = vrcp.f32 %v1795_v37  ;;  %v1736_v2 = vadd.f32 %v3334_v39, %v1705_v59 }
 0x2e7   :  { %v2297_v7 = vpop.eup %2296  ;;  %2308 = vpow2.f32 %v2019_v16 }
 0x2e8   :  { %v1796_v1 = vadd.f32 1.0, %v2297_v7  ;;  %v2020_v46 = vmul.f32 -1.442695, %v1736_v2 }
 0x2e9   :  { %v1707_v18 = vpop.xlane.xlu0 %1706 }
 0x2ea   :  { %2310 = vrcp.f32 %v1796_v1  ;;  %v1737_v5 = vadd.f32 %v3334_v39, %v1707_v18 }
 0x2eb   :  { %v2299_v19 = vpop.eup %2298  ;;  %2312 = vpow2.f32 %v2020_v46 }
 0x2ec   :  { %v2301_v0 = vpop.eup %2300  ;;  %v2021_v50 = vmul.f32 -1.442695, %v1737_v5  ;;  %1841 = vxpose.xlu0.b32.start [1/16] (narrow) %v2299_v19, 8 }
 0x2ed   :  { %v1797_v25 = vadd.f32 1.0, %v2301_v0  ;;  %v1709_v54 = vpop.xlane.xlu1 %1708 }
 0x2ee   :  { %2314 = vpow2.f32 %v2021_v50  ;;  %v1738_v22 = vadd.f32 %v3334_v39, %v1709_v54 }
 0x2ef   :  { %v2303_v26 = vpop.eup %2302  ;;  %2316 = vrcp.f32 %v1797_v25 }
 0x2f0   :  { %v2305_v60 = vpop.eup %2304  ;;  %v2022_v29 = vmul.f32 -1.442695, %v1738_v22  ;;  %1842 = vxpose.xlu0.b32.cont [2/16] (narrow) %v2303_v26, 8 }
 0x2f1   :  { %v1798_v9 = vadd.f32 1.0, %v2305_v60  ;;  %v1711_v57 = vpop.xlane.xlu0 %1710 }
 0x2f2   :  { %2318 = vpow2.f32 %v2022_v29  ;;  %v1739_v23 = vadd.f32 %v3334_v39, %v1711_v57 }
 0x2f3   :  { %v2307_v3 = vpop.eup %2306  ;;  %2320 = vrcp.f32 %v1798_v9 }
 0x2f4   :  { %v2309_v4 = vpop.eup %2308  ;;  %v2023_v35 = vmul.f32 -1.442695, %v1739_v23  ;;  %1843 = vxpose.xlu0.b32.cont [3/16] (narrow) %v2307_v3, 8 }
 0x2f5   :  { %v1799_v27 = vadd.f32 1.0, %v2309_v4  ;;  %v1713_v28 = vpop.xlane.xlu1 %1712 }
 0x2f6   :  { %2322 = vpow2.f32 %v2023_v35  ;;  %v1740_v47 = vadd.f32 %v3334_v39, %v1713_v28 }
 0x2f7   :  { %v2311_v38 = vpop.eup %2310  ;;  %2324 = vrcp.f32 %v1799_v27 }
 0x2f8   :  { %v2313_v53 = vpop.eup %2312  ;;  %v2024_v34 = vmul.f32 -1.442695, %v1740_v47  ;;  %1844 = vxpose.xlu0.b32.cont [4/16] (narrow) %v2311_v38, 8 }
 0x2f9   :  { %v1800_v31 = vadd.f32 1.0, %v2313_v53  ;;  %v1715_v10 = vpop.xlane.xlu0 %1714 }
 0x2fa   :  { %2326 = vpow2.f32 %v2024_v34  ;;  %v1741_v30 = vadd.f32 %v3334_v39, %v1715_v10 }
 0x2fb   :  { %v2315_v6 = vpop.eup %2314  ;;  %2328 = vrcp.f32 %v1800_v31 }
 0x2fc   :  { %v2317_v63 = vpop.eup %2316  ;;  %v1801_v11 = vadd.f32 1.0, %v2315_v6  ;;  %v2025_v45 = vmul.f32 -1.442695, %v1741_v30 }
 0x2fd   :  { %1845 = vxpose.xlu0.b32.cont [5/16] (narrow) %v2317_v63, 8  ;;  %v1717_v20 = vpop.xlane.xlu1 %1716 }
 0x2fe   :  { %2330 = vrcp.f32 %v1801_v11  ;;  %v1742_v42 = vadd.f32 %v3334_v39, %v1717_v20 }
 0x2ff   :  { %v2319_v24 = vpop.eup %2318  ;;  %2332 = vpow2.f32 %v2025_v45 }
 0x300   :  { %v2321_v13 = vpop.eup %2320  ;;  %v1802_v55 = vadd.f32 1.0, %v2319_v24  ;;  %v2026_v12 = vmul.f32 -1.442695, %v1742_v42 }
 0x301   :  { %1846 = vxpose.xlu0.b32.cont [6/16] (narrow) %v2321_v13, 8  ;;  %v1719_v61 = vpop.xlane.xlu0 %1718 }
 0x302   :  { %2334 = vrcp.f32 %v1802_v55  ;;  %v1743_v33 = vadd.f32 %v3334_v39, %v1719_v61 }
 0x303   :  { %v2323_v49 = vpop.eup %2322  ;;  %2336 = vpow2.f32 %v2026_v12 }
 0x304   :  { %v2325_v14 = vpop.eup %2324  ;;  %v1803_v52 = vadd.f32 1.0, %v2323_v49  ;;  %v2027_v44 = vmul.f32 -1.442695, %v1743_v33 }
 0x305   :  { %1847 = vxpose.xlu0.b32.cont [7/16] (narrow) %v2325_v14, 8  ;;  %v1721_v56 = vpop.xlane.xlu1 %1720 }
 0x306   :  { %2338 = vrcp.f32 %v1803_v52  ;;  %v1744_v17 = vadd.f32 %v3334_v39, %v1721_v56 }
 0x307   :  { %v2327_v41 = vpop.eup %2326  ;;  %2340 = vpow2.f32 %v2027_v44 }
 0x308   :  { %v2329_v8 = vpop.eup %2328  ;;  %v1804_v32 = vadd.f32 1.0, %v2327_v41  ;;  %v2028_v62 = vmul.f32 -1.442695, %v1744_v17 }
 0x309   :  { %1848 = vxpose.xlu0.b32.cont [8/16] (narrow) %v2329_v8, 8 }
 0x30a   :  { %2342 = vrcp.f32 %v1804_v32 }
 0x30b   :  { %v2331_v36 = vpop.eup %2330  ;;  %2344 = vpow2.f32 %v2028_v62 }
 0x30c   :  { %v2333_v40 = vpop.eup %2332 }
 0x30d   :  { %v1805_v58 = vadd.f32 1.0, %v2333_v40  ;;  %1849 = vxpose.xlu0.b32.cont [9/16] (narrow) %v2331_v36, 8 }
 0x30f   :  { %v2335_v43 = vpop.eup %2334  ;;  %2346 = vrcp.f32 %v1805_v58 }
 0x310   :  { %v2337_v51 = vpop.eup %2336 }
 0x311   :  { %v1806_v48 = vadd.f32 1.0, %v2337_v51  ;;  %1850 = vxpose.xlu0.b32.cont [10/16] (narrow) %v2335_v43, 8 }
 0x313   :  { %v2339_v15 = vpop.eup %2338  ;;  %2348 = vrcp.f32 %v1806_v48 }
 0x314   :  { %v2341_v39 = vpop.eup %2340 }
 0x315   :  { %v1807_v21 = vadd.f32 1.0, %v2341_v39  ;;  %1851 = vxpose.xlu0.b32.cont [11/16] (narrow) %v2339_v15, 8 }
 0x317   :  { %v2343_v37 = vpop.eup %2342  ;;  %2350 = vrcp.f32 %v1807_v21 }
 0x318   :  { %v2345_v16 = vpop.eup %2344 }
 0x319   :  { %v1808_v59 = vadd.f32 1.0, %v2345_v16  ;;  %1852 = vxpose.xlu0.b32.cont [12/16] (narrow) %v2343_v37, 8 }
 0x31b   :  { %2352 = vrcp.f32 %v1808_v59 }
 0x31c   :  { %v2347_v2 = vpop.eup %2346 }
 0x31d   :  { %1853 = vxpose.xlu0.b32.cont [13/16] (narrow) %v2347_v2, 8 }
 0x320   :  { %v2349_v7 = vpop.eup %2348 }
 0x321   :  { %1854 = vxpose.xlu0.b32.cont [14/16] (narrow) %v2349_v7, 8 }
 0x324   :  { %v2351_v1 = vpop.eup %2350 }
 0x325   :  { %1855 = vxpose.xlu0.b32.cont [15/16] (narrow) %v2351_v1, 8 }
 0x328   :  { %v2353_v46 = vpop.eup %2352 }
 0x329   :  { %1856 = vxpose.xlu0.b32.end [16/16] (narrow) %v2353_v46, 8 }
 0x369   :  { %v1857_v18 = vpop.trf.xlu0 }
 0x36a   :  { %1873 = vst [vmem:[#allocation3] sm:$0x1] %v1857_v18 }
 0x36b   :  { %2365 = shalt.err (!%p2362_p4)
}
 0x36c   :  { %1883 = dma.vmem_to_hbm [thread:$0]  %s1881_s5, 16, %s3362_s7, [#allocation4]  }
 0x36d   :  { %2374 = dma.done.wait [#allocation4], 16  }
 0x36e   :  { %2375 = vsyncadd [#allocation4], 4294967280 }
 0x36f   :  { %1887 = vsyncpa [#allocation4], 1 }

</bundles_post_ra>
